<compile_context>
chip_gen: v7x
topology: tpu7x:2x2x1
jax: 0.10.0
libtpu: 0.0.40
codegen_flags: <defaults>
</compile_context>

<pallas_src>
import math
import functools

import jax
import jax.numpy as jnp
from jax import lax
from jax.experimental import pallas as pl
from jax.experimental.pallas import tpu as pltpu


# ----------------------------- in-kernel helpers (traced) --------------------------------

def _layernorm(x, g, b, eps=1e-5):
    mu = jnp.mean(x, axis=-1, keepdims=True)
    var = jnp.mean((x - mu) ** 2, axis=-1, keepdims=True)
    return (x - mu) * lax.rsqrt(var + eps) * g + b


def _mha(q_in, kv_in, wqkv, wo, mask, num_heads):
    """Multi-head attention on flattened (rows, H) tiles.

    q_in:(Nq,H)  kv_in:(Nk,H)  wqkv:(H,3H)  wo:(H,H)  mask:(Nq,Nk) bool.
    The whole batch is flattened onto the sublane axis; `mask` already encodes the
    same-batch block structure plus causal / enc_valid_lens masking.
    """
    H = wo.shape[0]
    hd = H // num_heads
    if q_in is kv_in:
        # self-attention: one fused (N,H)@(H,3H) GEMM for Q,K,V
        qkv = jnp.dot(q_in, wqkv, preferred_element_type=jnp.float32)
        q, k, v = qkv[:, :H], qkv[:, H:2 * H], qkv[:, 2 * H:]
    else:
        # cross-attention: Q from decoder stream; fused K|V GEMM on the encoder stream
        q = jnp.dot(q_in, wqkv[:, :H], preferred_element_type=jnp.float32)
        kv = jnp.dot(kv_in, wqkv[:, H:], preferred_element_type=jnp.float32)
        k, v = kv[:, :H], kv[:, H:]

    scale = 1.0 / math.sqrt(hd)
    outs = []
    for h in range(num_heads):                      # static unroll over heads
        qh = q[:, h * hd:(h + 1) * hd]
        kh = k[:, h * hd:(h + 1) * hd]
        vh = v[:, h * hd:(h + 1) * hd]
        s = lax.dot_general(qh, kh, (((1,), (1,)), ((), ())),
                            preferred_element_type=jnp.float32) * scale
        s = jnp.where(mask, s, -1000000.0)          # d2l masked_softmax fill value
        p = jax.nn.softmax(s, axis=-1)
        outs.append(jnp.dot(p, vh, preferred_element_type=jnp.float32))
    # concat heads -> single W_o GEMM (equivalent to concat + W_o, no per-head acc chain)
    ctx = jnp.concatenate(outs, axis=-1)
    return jnp.dot(ctx, wo, preferred_element_type=jnp.float32)


# ----------------------------- fused decoder-stack kernel --------------------------------

def decoder_stack_kernel(x_ref, enc_ref, smask_ref, cmask_ref,
                         wqkv1_ref, wo1_ref, g1_ref, b1_ref,
                         wqkv2_ref, wo2_ref, g2_ref, b2_ref,
                         wf1_ref, bf1_ref, wf2_ref, bf2_ref, g3_ref, b3_ref,
                         wd_ref, bd_ref,
                         kv_ref, logits_ref,
                         x_scr,
                         *, num_heads):
    l = pl.program_id(0)

    @pl.when(l == 0)
    def _():
        x_scr[...] = x_ref[...]          # bring embedded input resident in VMEM

    x = x_scr[...]                       # (B*T, H) layer input
    kv_ref[0] = x                        # state[2][l] = key_values (== X, no cache)

    smask = smask_ref[...] > 0.5
    cmask = cmask_ref[...] > 0.5

    # --- masked self-attention + AddNorm ---
    x2 = _mha(x, x, wqkv1_ref[0], wo1_ref[0], smask, num_heads)
    y = _layernorm(x + x2, g1_ref[0], b1_ref[0])

    # --- encoder-decoder cross attention + AddNorm ---
    y2 = _mha(y, enc_ref[...], wqkv2_ref[0], wo2_ref[0], cmask, num_heads)
    z = _layernorm(y + y2, g2_ref[0], b2_ref[0])

    # --- position-wise FFN + AddNorm ---
    h1 = jnp.maximum(
        jnp.dot(z, wf1_ref[0], preferred_element_type=jnp.float32) + bf1_ref[0], 0.0)
    f = jnp.dot(h1, wf2_ref[0], preferred_element_type=jnp.float32) + bf2_ref[0]
    x_new = _layernorm(z + f, g3_ref[0], b3_ref[0])
    x_scr[...] = x_new

    # --- final vocab projection fused into the last grid step (lane-dense, V padded) ---
    @pl.when(l == pl.num_programs(0) - 1)
    def _():
        logits_ref[...] = (jnp.dot(x_new, wd_ref[...],
                                   preferred_element_type=jnp.float32) + bd_ref[...])


# ----------------------------- wrappers ---------------------------------------------------

_LAYER_PARAM_NAMES = ('wqkv1', 'wo1', 'g1', 'b1', 'wqkv2', 'wo2', 'g2', 'b2',
                      'wf1', 'bf1', 'wf2', 'bf2', 'g3', 'b3')


def decoder_stack(x_flat, enc_flat, self_mask, cross_mask, stacked, wd_pad, bd_pad,
                  num_heads):
    L = stacked[0].shape[0]
    BT, H = x_flat.shape
    VP = wd_pad.shape[1]

    def const_spec(a):
        nd = a.ndim
        return pl.BlockSpec(a.shape, lambda l, nd=nd: (0,) * nd)

    def layer_spec(a):
        nd = a.ndim
        return pl.BlockSpec((1,) + a.shape[1:], lambda l, nd=nd: (l,) + (0,) * (nd - 1))

    in_specs = ([const_spec(x_flat), const_spec(enc_flat),
                 const_spec(self_mask), const_spec(cross_mask)]
                + [layer_spec(a) for a in stacked]
                + [const_spec(wd_pad), const_spec(bd_pad)])

    kernel = functools.partial(decoder_stack_kernel, num_heads=num_heads)
    kv_all, logits_pad = pl.pallas_call(
        kernel,
        out_shape=(jax.ShapeDtypeStruct((L, BT, H), jnp.float32),     # per-layer inputs
                   jax.ShapeDtypeStruct((BT, VP), jnp.float32)),      # padded logits
        grid=(L,),
        in_specs=in_specs,
        out_specs=(pl.BlockSpec((1, BT, H), lambda l: (l, 0, 0)),
                   pl.BlockSpec((BT, VP), lambda l: (0, 0))),
        scratch_shapes=[pltpu.VMEM((BT, H), jnp.float32)],
        compiler_params=pltpu.CompilerParams(dimension_semantics=("arbitrary",)),
    )(x_flat, enc_flat, self_mask, cross_mask, *stacked, wd_pad, bd_pad)
    return kv_all, logits_pad


# ----------------------------- parameters / forward ---------------------------------------

def positional_encoding(max_len, H):
    pos = jnp.arange(max_len, dtype=jnp.float32)[:, None]
    div = jnp.power(10000.0, jnp.arange(0, H, 2, dtype=jnp.float32) / H)
    X = pos / div
    P = jnp.zeros((max_len, H), jnp.float32)
    P = P.at[:, 0::2].set(jnp.sin(X))
    P = P.at[:, 1::2].set(jnp.cos(X))
    return P[None]  # (1, max_len, H)


def init_params(key, vocab, H, F, num_layers):
    keys = jax.random.split(key, 2 + num_layers)

    def nrm(k, shape):
        return jax.random.normal(k, shape, jnp.float32) * 0.1

    emb = nrm(keys[0], (vocab, H))
    VP = ((vocab + 127) // 128) * 128                 # lane-dense padded vocab
    wd = nrm(keys[1], (H, vocab))
    wd_pad = jnp.zeros((H, VP), jnp.float32).at[:, :vocab].set(wd)
    bd_pad = jnp.zeros((1, VP), jnp.float32)

    per = {name: [] for name in _LAYER_PARAM_NAMES}
    for i in range(num_layers):
        lk = jax.random.split(keys[2 + i], 10)
        per['wqkv1'].append(jnp.concatenate(
            [nrm(lk[0], (H, H)), nrm(lk[1], (H, H)), nrm(lk[2], (H, H))], axis=1))
        per['wo1'].append(nrm(lk[3], (H, H)))
        per['g1'].append(jnp.ones((1, H), jnp.float32))
        per['b1'].append(jnp.zeros((1, H), jnp.float32))
        per['wqkv2'].append(jnp.concatenate(
            [nrm(lk[4], (H, H)), nrm(lk[5], (H, H)), nrm(lk[6], (H, H))], axis=1))
        per['wo2'].append(nrm(lk[7], (H, H)))
        per['g2'].append(jnp.ones((1, H), jnp.float32))
        per['b2'].append(jnp.zeros((1, H), jnp.float32))
        per['wf1'].append(nrm(lk[8], (H, F)))
        per['bf1'].append(jnp.zeros((1, F), jnp.float32))
        per['wf2'].append(nrm(lk[9], (F, H)))
        per['bf2'].append(jnp.zeros((1, H), jnp.float32))
        per['g3'].append(jnp.ones((1, H), jnp.float32))
        per['b3'].append(jnp.zeros((1, H), jnp.float32))
    stacked = tuple(jnp.stack(per[name], axis=0) for name in _LAYER_PARAM_NAMES)
    P = positional_encoding(1000, H)
    return emb, P, stacked, wd_pad, bd_pad, vocab


def transformer_decoder_forward(tokens, enc_outputs, enc_valid_lens, params, num_heads):
    emb, P, stacked, wd_pad, bd_pad, vocab = params
    B, T = tokens.shape
    S = enc_outputs.shape[1]
    H = emb.shape[1]
    L = stacked[0].shape[0]

    # embedding gather + positional encoding kept as plain-JAX glue
    # TODO(synk): dropout omitted (p=0.0 -> identity)
    x = emb[tokens] * math.sqrt(H) + P[:, :T, :]
    x_flat = x.reshape(B * T, H).astype(jnp.float32)
    enc_flat = enc_outputs.reshape(B * S, H).astype(jnp.float32)

    # Masks hoisted out of the kernel (constant across the layer grid axis):
    #   self:  same batch AND causal (training-mode dec_valid_lens = t+1)
    #   cross: same batch AND key position < enc_valid_lens[batch]
    row_b = jnp.repeat(jnp.arange(B), T)
    row_t = jnp.tile(jnp.arange(T), B)
    col_b = jnp.repeat(jnp.arange(B), S)
    col_s = jnp.tile(jnp.arange(S), B)
    self_mask = ((row_b[:, None] == row_b[None, :]) &
                 (row_t[None, :] <= row_t[:, None])).astype(jnp.float32)
    cross_mask = ((row_b[:, None] == col_b[None, :]) &
                  (col_s[None, :] < enc_valid_lens[col_b][None, :])).astype(jnp.float32)

    kv_all, logits_pad = decoder_stack(x_flat, enc_flat, self_mask, cross_mask,
                                       stacked, wd_pad, bd_pad, num_heads)
    logits = logits_pad[:, :vocab].reshape(B, T, vocab)
    state_kv = [kv_all[i].reshape(B, T, H) for i in range(L)]
    state = [enc_outputs, enc_valid_lens, state_kv]
    return logits, state


if __name__ == "__main__":
    B, T, S = 2, 8, 8
    vocab, H, F_hid, num_heads, num_layers = 24, 32, 64, 4, 2

    key = jax.random.PRNGKey(0)
    k_tok, k_enc, k_par = jax.random.split(key, 3)
    tokens = jax.random.randint(k_tok, (B, T), 0, vocab)
    enc_outputs = jax.random.normal(k_enc, (B, S, H), jnp.float32)
    enc_valid_lens = jnp.array([5, 8], dtype=jnp.int32)

    params = init_params(k_par, vocab, H, F_hid, num_layers)

    logits, state = transformer_decoder_forward(
        tokens, enc_outputs, enc_valid_lens, params, num_heads)
    jax.block_until_ready(logits)

    assert logits.shape == (B, T, vocab)
    assert jnp.all(jnp.isfinite(logits))
    assert len(state[2]) == num_layers and state[2][0].shape == (B, T, H)
    print("KERNEL_OK")
</pallas_src>

<mosaic_0001>
module attributes {stable_mosaic.version = 11 : i64} {
  func.func @decoder_stack_kernel(%arg0: i32, %arg1: memref<16x32xf32, #tpu.memory_space<vmem>>, %arg2: memref<16x32xf32, #tpu.memory_space<vmem>>, %arg3: memref<16x16xf32, #tpu.memory_space<vmem>>, %arg4: memref<16x16xf32, #tpu.memory_space<vmem>>, %arg5: memref<1x32x96xf32, #tpu.memory_space<vmem>>, %arg6: memref<1x32x32xf32, #tpu.memory_space<vmem>>, %arg7: memref<1x1x32xf32, #tpu.memory_space<vmem>>, %arg8: memref<1x1x32xf32, #tpu.memory_space<vmem>>, %arg9: memref<1x32x96xf32, #tpu.memory_space<vmem>>, %arg10: memref<1x32x32xf32, #tpu.memory_space<vmem>>, %arg11: memref<1x1x32xf32, #tpu.memory_space<vmem>>, %arg12: memref<1x1x32xf32, #tpu.memory_space<vmem>>, %arg13: memref<1x32x64xf32, #tpu.memory_space<vmem>>, %arg14: memref<1x1x64xf32, #tpu.memory_space<vmem>>, %arg15: memref<1x64x32xf32, #tpu.memory_space<vmem>>, %arg16: memref<1x1x32xf32, #tpu.memory_space<vmem>>, %arg17: memref<1x1x32xf32, #tpu.memory_space<vmem>>, %arg18: memref<1x1x32xf32, #tpu.memory_space<vmem>>, %arg19: memref<32x128xf32, #tpu.memory_space<vmem>>, %arg20: memref<1x128xf32, #tpu.memory_space<vmem>>, %arg21: memref<1x16x32xf32, #tpu.memory_space<vmem>>, %arg22: memref<16x128xf32, #tpu.memory_space<vmem>>, %arg23: memref<16x32xf32, #tpu.memory_space<vmem>>) attributes {dimension_semantics = [#tpu.dimension_semantics<arbitrary>], iteration_bounds = array<i64: 2>, scalar_prefetch = 0 : i64, scratch_operands = 1 : i64, tpu.core_type = #tpu.core_type<tc>, window_params = [{pipeline_mode = #tpu.pipeline_mode<synchronous>, transform_indices = @transform_0, window_bounds = array<i64: 16, 32>}, {pipeline_mode = #tpu.pipeline_mode<synchronous>, transform_indices = @transform_1, window_bounds = array<i64: 16, 32>}, {pipeline_mode = #tpu.pipeline_mode<synchronous>, transform_indices = @transform_2, window_bounds = array<i64: 16, 16>}, {pipeline_mode = #tpu.pipeline_mode<synchronous>, transform_indices = @transform_3, window_bounds = array<i64: 16, 16>}, {transform_indices = @transform_4, window_bounds = array<i64: 1, 32, 96>}, {transform_indices = @transform_5, window_bounds = array<i64: 1, 32, 32>}, {transform_indices = @transform_6, window_bounds = array<i64: 1, 1, 32>}, {transform_indices = @transform_7, window_bounds = array<i64: 1, 1, 32>}, {transform_indices = @transform_8, window_bounds = array<i64: 1, 32, 96>}, {transform_indices = @transform_9, window_bounds = array<i64: 1, 32, 32>}, {transform_indices = @transform_10, window_bounds = array<i64: 1, 1, 32>}, {transform_indices = @transform_11, window_bounds = array<i64: 1, 1, 32>}, {transform_indices = @transform_12, window_bounds = array<i64: 1, 32, 64>}, {transform_indices = @transform_13, window_bounds = array<i64: 1, 1, 64>}, {transform_indices = @transform_14, window_bounds = array<i64: 1, 64, 32>}, {transform_indices = @transform_15, window_bounds = array<i64: 1, 1, 32>}, {transform_indices = @transform_16, window_bounds = array<i64: 1, 1, 32>}, {transform_indices = @transform_17, window_bounds = array<i64: 1, 1, 32>}, {pipeline_mode = #tpu.pipeline_mode<synchronous>, transform_indices = @transform_18, window_bounds = array<i64: 32, 128>}, {pipeline_mode = #tpu.pipeline_mode<synchronous>, transform_indices = @transform_19, window_bounds = array<i64: 1, 128>}, {transform_indices = @transform_20, window_bounds = array<i64: 1, 16, 32>}, {pipeline_mode = #tpu.pipeline_mode<synchronous>, transform_indices = @transform_21, window_bounds = array<i64: 16, 128>}]} {
    %c0_i32 = arith.constant 0 : i32
    %0 = arith.cmpi eq, %arg0, %c0_i32 : i32
    %1 = arith.extui %0 : i1 to i32
    %c0_i32_0 = arith.constant 0 : i32
    %2 = arith.cmpi ne, %1, %c0_i32_0 : i32
    scf.if %2 {
      %c0_136 = arith.constant 0 : index
      %c0_137 = arith.constant 0 : index
      %297 = vector.load %arg1[%c0_136, %c0_137] : memref<16x32xf32, #tpu.memory_space<vmem>>, vector<16x32xf32>
      %c0_138 = arith.constant 0 : index
      %c0_139 = arith.constant 0 : index
      %298 = vector.load %arg23[%c0_138, %c0_139] : memref<16x32xf32, #tpu.memory_space<vmem>>, vector<16x32xf32>
      tpu.vector_store %arg23[%c0_138, %c0_139], %297 {strides = array<i32>} : memref<16x32xf32, #tpu.memory_space<vmem>>, vector<16x32xf32>,
    } else {
    }
    %c0 = arith.constant 0 : index
    %c0_1 = arith.constant 0 : index
    %3 = vector.load %arg23[%c0, %c0_1] : memref<16x32xf32, #tpu.memory_space<vmem>>, vector<16x32xf32>
    %c0_2 = arith.constant 0 : index
    %c0_3 = arith.constant 0 : index
    %c0_4 = arith.constant 0 : index
    %4 = vector.load %arg21[%c0_2, %c0_3, %c0_4] : memref<1x16x32xf32, #tpu.memory_space<vmem>>, vector<1x16x32xf32>
    %5 = vector.shape_cast %4 : vector<1x16x32xf32> to vector<16x32xf32>
    %6 = vector.shape_cast %3 : vector<16x32xf32> to vector<1x16x32xf32>
    tpu.vector_store %arg21[%c0_2, %c0_3, %c0_4], %6 {strides = array<i32>} : memref<1x16x32xf32, #tpu.memory_space<vmem>>, vector<1x16x32xf32>,
    %c0_5 = arith.constant 0 : index
    %c0_6 = arith.constant 0 : index
    %7 = vector.load %arg3[%c0_5, %c0_6] : memref<16x16xf32, #tpu.memory_space<vmem>>, vector<16x16xf32>
    %cst = arith.constant 5.000000e-01 : f32
    %8 = vector.broadcast %cst : f32 to vector<16x16xf32>
    %9 = arith.cmpf ogt, %7, %8 : vector<16x16xf32>
    %c0_7 = arith.constant 0 : index
    %c0_8 = arith.constant 0 : index
    %10 = vector.load %arg4[%c0_7, %c0_8] : memref<16x16xf32, #tpu.memory_space<vmem>>, vector<16x16xf32>
    %cst_9 = arith.constant 5.000000e-01 : f32
    %11 = vector.broadcast %cst_9 : f32 to vector<16x16xf32>
    %12 = arith.cmpf ogt, %10, %11 : vector<16x16xf32>
    %c0_10 = arith.constant 0 : index
    %c0_11 = arith.constant 0 : index
    %c0_12 = arith.constant 0 : index
    %13 = vector.load %arg5[%c0_10, %c0_11, %c0_12] : memref<1x32x96xf32, #tpu.memory_space<vmem>>, vector<1x32x96xf32>
    %14 = vector.shape_cast %13 : vector<1x32x96xf32> to vector<32x96xf32>
    %c0_13 = arith.constant 0 : index
    %c0_14 = arith.constant 0 : index
    %c0_15 = arith.constant 0 : index
    %15 = vector.load %arg6[%c0_13, %c0_14, %c0_15] : memref<1x32x32xf32, #tpu.memory_space<vmem>>, vector<1x32x32xf32>
    %16 = vector.shape_cast %15 : vector<1x32x32xf32> to vector<32x32xf32>
    %cst_16 = arith.constant dense<0.000000e+00> : vector<16x96xf32>
    %17 = tpu.matmul %3, %14, %cst_16 {dimension_numbers = #tpu.dot_dimension_numbers<[1], [0], [0], [1], [0, 0, 1, 1], [], []>} : vector<16x32xf32>, vector<32x96xf32>, vector<16x96xf32> -> vector<16x96xf32>
    %18 = vector.extract_strided_slice %17 {offsets = [0, 0], sizes = [16, 32], strides = [1, 1]} : vector<16x96xf32> to vector<16x32xf32>
    %19 = vector.extract_strided_slice %17 {offsets = [0, 32], sizes = [16, 32], strides = [1, 1]} : vector<16x96xf32> to vector<16x32xf32>
    %20 = vector.extract_strided_slice %17 {offsets = [0, 64], sizes = [16, 32], strides = [1, 1]} : vector<16x96xf32> to vector<16x32xf32>
    %21 = vector.extract_strided_slice %18 {offsets = [0, 0], sizes = [16, 8], strides = [1, 1]} : vector<16x32xf32> to vector<16x8xf32>
    %22 = vector.extract_strided_slice %19 {offsets = [0, 0], sizes = [16, 8], strides = [1, 1]} : vector<16x32xf32> to vector<16x8xf32>
    %23 = vector.extract_strided_slice %20 {offsets = [0, 0], sizes = [16, 8], strides = [1, 1]} : vector<16x32xf32> to vector<16x8xf32>
    %cst_17 = arith.constant dense<0.000000e+00> : vector<16x16xf32>
    %24 = tpu.matmul %21, %22, %cst_17 {dimension_numbers = #tpu.dot_dimension_numbers<[1], [1], [0], [0], [0, 0, 1, 0], [], []>} : vector<16x8xf32>, vector<16x8xf32>, vector<16x16xf32> -> vector<16x16xf32>
    %cst_18 = arith.constant 0.353553385 : f32
    %25 = vector.broadcast %cst_18 : f32 to vector<16x16xf32>
    %26 = arith.mulf %24, %25 : vector<16x16xf32>
    %cst_19 = arith.constant -1.000000e+06 : f32
    %27 = vector.broadcast %cst_19 : f32 to vector<16x16xf32>
    %28 = arith.select %9, %26, %27 : vector<16x16xi1>, vector<16x16xf32>
    %cst_20 = arith.constant dense<0xFF800000> : vector<16xf32>
    %29 = vector.multi_reduction <maximumf>, %28, %cst_20 [1] : vector<16x16xf32> to vector<16xf32>
    %cst_21 = arith.constant 0xFF800000 : f32
    %30 = vector.broadcast %cst_21 : f32 to vector<16xf32>
    %31 = arith.maximumf %30, %29 : vector<16xf32>
    %32 = vector.shape_cast %31 : vector<16xf32> to vector<16x1xf32>
    %33 = vector.broadcast %32 : vector<16x1xf32> to vector<16x16xf32>
    %34 = arith.subf %28, %33 : vector<16x16xf32>
    %35 = math.exp %34 : vector<16x16xf32>
    %cst_22 = arith.constant dense<0.000000e+00> : vector<16xf32>
    %36 = vector.multi_reduction <add>, %35, %cst_22 [1] : vector<16x16xf32> to vector<16xf32>
    %37 = vector.shape_cast %36 : vector<16xf32> to vector<16x1xf32>
    %38 = vector.broadcast %37 : vector<16x1xf32> to vector<16x16xf32>
    %39 = arith.divf %35, %38 : vector<16x16xf32>
    %cst_23 = arith.constant dense<0.000000e+00> : vector<16x8xf32>
    %40 = tpu.matmul %39, %23, %cst_23 {dimension_numbers = #tpu.dot_dimension_numbers<[1], [0], [0], [1], [0, 0, 1, 1], [], []>} : vector<16x16xf32>, vector<16x8xf32>, vector<16x8xf32> -> vector<16x8xf32>
    %41 = vector.extract_strided_slice %18 {offsets = [0, 8], sizes = [16, 8], strides = [1, 1]} : vector<16x32xf32> to vector<16x8xf32>
    %42 = vector.extract_strided_slice %19 {offsets = [0, 8], sizes = [16, 8], strides = [1, 1]} : vector<16x32xf32> to vector<16x8xf32>
    %43 = vector.extract_strided_slice %20 {offsets = [0, 8], sizes = [16, 8], strides = [1, 1]} : vector<16x32xf32> to vector<16x8xf32>
    %cst_24 = arith.constant dense<0.000000e+00> : vector<16x16xf32>
    %44 = tpu.matmul %41, %42, %cst_24 {dimension_numbers = #tpu.dot_dimension_numbers<[1], [1], [0], [0], [0, 0, 1, 0], [], []>} : vector<16x8xf32>, vector<16x8xf32>, vector<16x16xf32> -> vector<16x16xf32>
    %cst_25 = arith.constant 0.353553385 : f32
    %45 = vector.broadcast %cst_25 : f32 to vector<16x16xf32>
    %46 = arith.mulf %44, %45 : vector<16x16xf32>
    %cst_26 = arith.constant -1.000000e+06 : f32
    %47 = vector.broadcast %cst_26 : f32 to vector<16x16xf32>
    %48 = arith.select %9, %46, %47 : vector<16x16xi1>, vector<16x16xf32>
    %cst_27 = arith.constant dense<0xFF800000> : vector<16xf32>
    %49 = vector.multi_reduction <maximumf>, %48, %cst_27 [1] : vector<16x16xf32> to vector<16xf32>
    %cst_28 = arith.constant 0xFF800000 : f32
    %50 = vector.broadcast %cst_28 : f32 to vector<16xf32>
    %51 = arith.maximumf %50, %49 : vector<16xf32>
    %52 = vector.shape_cast %51 : vector<16xf32> to vector<16x1xf32>
    %53 = vector.broadcast %52 : vector<16x1xf32> to vector<16x16xf32>
    %54 = arith.subf %48, %53 : vector<16x16xf32>
    %55 = math.exp %54 : vector<16x16xf32>
    %cst_29 = arith.constant dense<0.000000e+00> : vector<16xf32>
    %56 = vector.multi_reduction <add>, %55, %cst_29 [1] : vector<16x16xf32> to vector<16xf32>
    %57 = vector.shape_cast %56 : vector<16xf32> to vector<16x1xf32>
    %58 = vector.broadcast %57 : vector<16x1xf32> to vector<16x16xf32>
    %59 = arith.divf %55, %58 : vector<16x16xf32>
    %cst_30 = arith.constant dense<0.000000e+00> : vector<16x8xf32>
    %60 = tpu.matmul %59, %43, %cst_30 {dimension_numbers = #tpu.dot_dimension_numbers<[1], [0], [0], [1], [0, 0, 1, 1], [], []>} : vector<16x16xf32>, vector<16x8xf32>, vector<16x8xf32> -> vector<16x8xf32>
    %61 = vector.extract_strided_slice %18 {offsets = [0, 16], sizes = [16, 8], strides = [1, 1]} : vector<16x32xf32> to vector<16x8xf32>
    %62 = vector.extract_strided_slice %19 {offsets = [0, 16], sizes = [16, 8], strides = [1, 1]} : vector<16x32xf32> to vector<16x8xf32>
    %63 = vector.extract_strided_slice %20 {offsets = [0, 16], sizes = [16, 8], strides = [1, 1]} : vector<16x32xf32> to vector<16x8xf32>
    %cst_31 = arith.constant dense<0.000000e+00> : vector<16x16xf32>
    %64 = tpu.matmul %61, %62, %cst_31 {dimension_numbers = #tpu.dot_dimension_numbers<[1], [1], [0], [0], [0, 0, 1, 0], [], []>} : vector<16x8xf32>, vector<16x8xf32>, vector<16x16xf32> -> vector<16x16xf32>
    %cst_32 = arith.constant 0.353553385 : f32
    %65 = vector.broadcast %cst_32 : f32 to vector<16x16xf32>
    %66 = arith.mulf %64, %65 : vector<16x16xf32>
    %cst_33 = arith.constant -1.000000e+06 : f32
    %67 = vector.broadcast %cst_33 : f32 to vector<16x16xf32>
    %68 = arith.select %9, %66, %67 : vector<16x16xi1>, vector<16x16xf32>
    %cst_34 = arith.constant dense<0xFF800000> : vector<16xf32>
    %69 = vector.multi_reduction <maximumf>, %68, %cst_34 [1] : vector<16x16xf32> to vector<16xf32>
    %cst_35 = arith.constant 0xFF800000 : f32
    %70 = vector.broadcast %cst_35 : f32 to vector<16xf32>
    %71 = arith.maximumf %70, %69 : vector<16xf32>
    %72 = vector.shape_cast %71 : vector<16xf32> to vector<16x1xf32>
    %73 = vector.broadcast %72 : vector<16x1xf32> to vector<16x16xf32>
    %74 = arith.subf %68, %73 : vector<16x16xf32>
    %75 = math.exp %74 : vector<16x16xf32>
    %cst_36 = arith.constant dense<0.000000e+00> : vector<16xf32>
    %76 = vector.multi_reduction <add>, %75, %cst_36 [1] : vector<16x16xf32> to vector<16xf32>
    %77 = vector.shape_cast %76 : vector<16xf32> to vector<16x1xf32>
    %78 = vector.broadcast %77 : vector<16x1xf32> to vector<16x16xf32>
    %79 = arith.divf %75, %78 : vector<16x16xf32>
    %cst_37 = arith.constant dense<0.000000e+00> : vector<16x8xf32>
    %80 = tpu.matmul %79, %63, %cst_37 {dimension_numbers = #tpu.dot_dimension_numbers<[1], [0], [0], [1], [0, 0, 1, 1], [], []>} : vector<16x16xf32>, vector<16x8xf32>, vector<16x8xf32> -> vector<16x8xf32>
    %81 = vector.extract_strided_slice %18 {offsets = [0, 24], sizes = [16, 8], strides = [1, 1]} : vector<16x32xf32> to vector<16x8xf32>
    %82 = vector.extract_strided_slice %19 {offsets = [0, 24], sizes = [16, 8], strides = [1, 1]} : vector<16x32xf32> to vector<16x8xf32>
    %83 = vector.extract_strided_slice %20 {offsets = [0, 24], sizes = [16, 8], strides = [1, 1]} : vector<16x32xf32> to vector<16x8xf32>
    %cst_38 = arith.constant dense<0.000000e+00> : vector<16x16xf32>
    %84 = tpu.matmul %81, %82, %cst_38 {dimension_numbers = #tpu.dot_dimension_numbers<[1], [1], [0], [0], [0, 0, 1, 0], [], []>} : vector<16x8xf32>, vector<16x8xf32>, vector<16x16xf32> -> vector<16x16xf32>
    %cst_39 = arith.constant 0.353553385 : f32
    %85 = vector.broadcast %cst_39 : f32 to vector<16x16xf32>
    %86 = arith.mulf %84, %85 : vector<16x16xf32>
    %cst_40 = arith.constant -1.000000e+06 : f32
    %87 = vector.broadcast %cst_40 : f32 to vector<16x16xf32>
    %88 = arith.select %9, %86, %87 : vector<16x16xi1>, vector<16x16xf32>
    %cst_41 = arith.constant dense<0xFF800000> : vector<16xf32>
    %89 = vector.multi_reduction <maximumf>, %88, %cst_41 [1] : vector<16x16xf32> to vector<16xf32>
    %cst_42 = arith.constant 0xFF800000 : f32
    %90 = vector.broadcast %cst_42 : f32 to vector<16xf32>
    %91 = arith.maximumf %90, %89 : vector<16xf32>
    %92 = vector.shape_cast %91 : vector<16xf32> to vector<16x1xf32>
    %93 = vector.broadcast %92 : vector<16x1xf32> to vector<16x16xf32>
    %94 = arith.subf %88, %93 : vector<16x16xf32>
    %95 = math.exp %94 : vector<16x16xf32>
    %cst_43 = arith.constant dense<0.000000e+00> : vector<16xf32>
    %96 = vector.multi_reduction <add>, %95, %cst_43 [1] : vector<16x16xf32> to vector<16xf32>
    %97 = vector.shape_cast %96 : vector<16xf32> to vector<16x1xf32>
    %98 = vector.broadcast %97 : vector<16x1xf32> to vector<16x16xf32>
    %99 = arith.divf %95, %98 : vector<16x16xf32>
    %cst_44 = arith.constant dense<0.000000e+00> : vector<16x8xf32>
    %100 = tpu.matmul %99, %83, %cst_44 {dimension_numbers = #tpu.dot_dimension_numbers<[1], [0], [0], [1], [0, 0, 1, 1], [], []>} : vector<16x16xf32>, vector<16x8xf32>, vector<16x8xf32> -> vector<16x8xf32>
    %101 = tpu.concatenate %40, %60, %80, %100 in 1 : vector<16x8xf32>, vector<16x8xf32>, vector<16x8xf32>, vector<16x8xf32> -> vector<16x32xf32>
    %cst_45 = arith.constant dense<0.000000e+00> : vector<16x32xf32>
    %102 = tpu.matmul %101, %16, %cst_45 {dimension_numbers = #tpu.dot_dimension_numbers<[1], [0], [0], [1], [0, 0, 1, 1], [], []>} : vector<16x32xf32>, vector<32x32xf32>, vector<16x32xf32> -> vector<16x32xf32>
    %103 = arith.addf %3, %102 : vector<16x32xf32>
    %c0_46 = arith.constant 0 : index
    %c0_47 = arith.constant 0 : index
    %c0_48 = arith.constant 0 : index
    %104 = vector.load %arg7[%c0_46, %c0_47, %c0_48] : memref<1x1x32xf32, #tpu.memory_space<vmem>>, vector<1x1x32xf32>
    %105 = vector.shape_cast %104 : vector<1x1x32xf32> to vector<1x32xf32>
    %c0_49 = arith.constant 0 : index
    %c0_50 = arith.constant 0 : index
    %c0_51 = arith.constant 0 : index
    %106 = vector.load %arg8[%c0_49, %c0_50, %c0_51] : memref<1x1x32xf32, #tpu.memory_space<vmem>>, vector<1x1x32xf32>
    %107 = vector.shape_cast %106 : vector<1x1x32xf32> to vector<1x32xf32>
    %cst_52 = arith.constant dense<0.000000e+00> : vector<16xf32>
    %108 = vector.multi_reduction <add>, %103, %cst_52 [1] : vector<16x32xf32> to vector<16xf32>
    %109 = vector.shape_cast %108 : vector<16xf32> to vector<16x1xf32>
    %cst_53 = arith.constant 3.200000e+01 : f32
    %110 = vector.broadcast %cst_53 : f32 to vector<16x1xf32>
    %111 = arith.divf %109, %110 : vector<16x1xf32>
    %112 = vector.broadcast %111 : vector<16x1xf32> to vector<16x32xf32>
    %113 = arith.subf %103, %112 : vector<16x32xf32>
    %114 = arith.mulf %113, %113 : vector<16x32xf32>
    %cst_54 = arith.constant dense<0.000000e+00> : vector<16xf32>
    %115 = vector.multi_reduction <add>, %114, %cst_54 [1] : vector<16x32xf32> to vector<16xf32>
    %116 = vector.shape_cast %115 : vector<16xf32> to vector<16x1xf32>
    %cst_55 = arith.constant 3.200000e+01 : f32
    %117 = vector.broadcast %cst_55 : f32 to vector<16x1xf32>
    %118 = arith.divf %116, %117 : vector<16x1xf32>
    %119 = vector.broadcast %111 : vector<16x1xf32> to vector<16x32xf32>
    %120 = arith.subf %103, %119 : vector<16x32xf32>
    %cst_56 = arith.constant 9.99999974E-6 : f32
    %121 = vector.broadcast %cst_56 : f32 to vector<16x1xf32>
    %122 = arith.addf %118, %121 : vector<16x1xf32>
    %123 = math.rsqrt %122 : vector<16x1xf32>
    %124 = vector.broadcast %123 : vector<16x1xf32> to vector<16x32xf32>
    %125 = arith.mulf %120, %124 : vector<16x32xf32>
    %126 = vector.broadcast %105 : vector<1x32xf32> to vector<16x32xf32>
    %127 = arith.mulf %125, %126 : vector<16x32xf32>
    %128 = vector.broadcast %107 : vector<1x32xf32> to vector<16x32xf32>
    %129 = arith.addf %127, %128 : vector<16x32xf32>
    %c0_57 = arith.constant 0 : index
    %c0_58 = arith.constant 0 : index
    %130 = vector.load %arg2[%c0_57, %c0_58] : memref<16x32xf32, #tpu.memory_space<vmem>>, vector<16x32xf32>
    %c0_59 = arith.constant 0 : index
    %c0_60 = arith.constant 0 : index
    %c0_61 = arith.constant 0 : index
    %131 = vector.load %arg9[%c0_59, %c0_60, %c0_61] : memref<1x32x96xf32, #tpu.memory_space<vmem>>, vector<1x32x96xf32>
    %132 = vector.shape_cast %131 : vector<1x32x96xf32> to vector<32x96xf32>
    %c0_62 = arith.constant 0 : index
    %c0_63 = arith.constant 0 : index
    %c0_64 = arith.constant 0 : index
    %133 = vector.load %arg10[%c0_62, %c0_63, %c0_64] : memref<1x32x32xf32, #tpu.memory_space<vmem>>, vector<1x32x32xf32>
    %134 = vector.shape_cast %133 : vector<1x32x32xf32> to vector<32x32xf32>
    %135 = vector.extract_strided_slice %132 {offsets = [0, 0], sizes = [32, 32], strides = [1, 1]} : vector<32x96xf32> to vector<32x32xf32>
    %cst_65 = arith.constant dense<0.000000e+00> : vector<16x32xf32>
    %136 = tpu.matmul %129, %135, %cst_65 {dimension_numbers = #tpu.dot_dimension_numbers<[1], [0], [0], [1], [0, 0, 1, 1], [], []>} : vector<16x32xf32>, vector<32x32xf32>, vector<16x32xf32> -> vector<16x32xf32>
    %137 = vector.extract_strided_slice %132 {offsets = [0, 32], sizes = [32, 64], strides = [1, 1]} : vector<32x96xf32> to vector<32x64xf32>
    %cst_66 = arith.constant dense<0.000000e+00> : vector<16x64xf32>
    %138 = tpu.matmul %130, %137, %cst_66 {dimension_numbers = #tpu.dot_dimension_numbers<[1], [0], [0], [1], [0, 0, 1, 1], [], []>} : vector<16x32xf32>, vector<32x64xf32>, vector<16x64xf32> -> vector<16x64xf32>
    %139 = vector.extract_strided_slice %138 {offsets = [0, 0], sizes = [16, 32], strides = [1, 1]} : vector<16x64xf32> to vector<16x32xf32>
    %140 = vector.extract_strided_slice %138 {offsets = [0, 32], sizes = [16, 32], strides = [1, 1]} : vector<16x64xf32> to vector<16x32xf32>
    %141 = vector.extract_strided_slice %136 {offsets = [0, 0], sizes = [16, 8], strides = [1, 1]} : vector<16x32xf32> to vector<16x8xf32>
    %142 = vector.extract_strided_slice %139 {offsets = [0, 0], sizes = [16, 8], strides = [1, 1]} : vector<16x32xf32> to vector<16x8xf32>
    %143 = vector.extract_strided_slice %140 {offsets = [0, 0], sizes = [16, 8], strides = [1, 1]} : vector<16x32xf32> to vector<16x8xf32>
    %cst_67 = arith.constant dense<0.000000e+00> : vector<16x16xf32>
    %144 = tpu.matmul %141, %142, %cst_67 {dimension_numbers = #tpu.dot_dimension_numbers<[1], [1], [0], [0], [0, 0, 1, 0], [], []>} : vector<16x8xf32>, vector<16x8xf32>, vector<16x16xf32> -> vector<16x16xf32>
    %cst_68 = arith.constant 0.353553385 : f32
    %145 = vector.broadcast %cst_68 : f32 to vector<16x16xf32>
    %146 = arith.mulf %144, %145 : vector<16x16xf32>
    %cst_69 = arith.constant -1.000000e+06 : f32
    %147 = vector.broadcast %cst_69 : f32 to vector<16x16xf32>
    %148 = arith.select %12, %146, %147 : vector<16x16xi1>, vector<16x16xf32>
    %cst_70 = arith.constant dense<0xFF800000> : vector<16xf32>
    %149 = vector.multi_reduction <maximumf>, %148, %cst_70 [1] : vector<16x16xf32> to vector<16xf32>
    %cst_71 = arith.constant 0xFF800000 : f32
    %150 = vector.broadcast %cst_71 : f32 to vector<16xf32>
    %151 = arith.maximumf %150, %149 : vector<16xf32>
    %152 = vector.shape_cast %151 : vector<16xf32> to vector<16x1xf32>
    %153 = vector.broadcast %152 : vector<16x1xf32> to vector<16x16xf32>
    %154 = arith.subf %148, %153 : vector<16x16xf32>
    %155 = math.exp %154 : vector<16x16xf32>
    %cst_72 = arith.constant dense<0.000000e+00> : vector<16xf32>
    %156 = vector.multi_reduction <add>, %155, %cst_72 [1] : vector<16x16xf32> to vector<16xf32>
    %157 = vector.shape_cast %156 : vector<16xf32> to vector<16x1xf32>
    %158 = vector.broadcast %157 : vector<16x1xf32> to vector<16x16xf32>
    %159 = arith.divf %155, %158 : vector<16x16xf32>
    %cst_73 = arith.constant dense<0.000000e+00> : vector<16x8xf32>
    %160 = tpu.matmul %159, %143, %cst_73 {dimension_numbers = #tpu.dot_dimension_numbers<[1], [0], [0], [1], [0, 0, 1, 1], [], []>} : vector<16x16xf32>, vector<16x8xf32>, vector<16x8xf32> -> vector<16x8xf32>
    %161 = vector.extract_strided_slice %136 {offsets = [0, 8], sizes = [16, 8], strides = [1, 1]} : vector<16x32xf32> to vector<16x8xf32>
    %162 = vector.extract_strided_slice %139 {offsets = [0, 8], sizes = [16, 8], strides = [1, 1]} : vector<16x32xf32> to vector<16x8xf32>
    %163 = vector.extract_strided_slice %140 {offsets = [0, 8], sizes = [16, 8], strides = [1, 1]} : vector<16x32xf32> to vector<16x8xf32>
    %cst_74 = arith.constant dense<0.000000e+00> : vector<16x16xf32>
    %164 = tpu.matmul %161, %162, %cst_74 {dimension_numbers = #tpu.dot_dimension_numbers<[1], [1], [0], [0], [0, 0, 1, 0], [], []>} : vector<16x8xf32>, vector<16x8xf32>, vector<16x16xf32> -> vector<16x16xf32>
    %cst_75 = arith.constant 0.353553385 : f32
    %165 = vector.broadcast %cst_75 : f32 to vector<16x16xf32>
    %166 = arith.mulf %164, %165 : vector<16x16xf32>
    %cst_76 = arith.constant -1.000000e+06 : f32
    %167 = vector.broadcast %cst_76 : f32 to vector<16x16xf32>
    %168 = arith.select %12, %166, %167 : vector<16x16xi1>, vector<16x16xf32>
    %cst_77 = arith.constant dense<0xFF800000> : vector<16xf32>
    %169 = vector.multi_reduction <maximumf>, %168, %cst_77 [1] : vector<16x16xf32> to vector<16xf32>
    %cst_78 = arith.constant 0xFF800000 : f32
    %170 = vector.broadcast %cst_78 : f32 to vector<16xf32>
    %171 = arith.maximumf %170, %169 : vector<16xf32>
    %172 = vector.shape_cast %171 : vector<16xf32> to vector<16x1xf32>
    %173 = vector.broadcast %172 : vector<16x1xf32> to vector<16x16xf32>
    %174 = arith.subf %168, %173 : vector<16x16xf32>
    %175 = math.exp %174 : vector<16x16xf32>
    %cst_79 = arith.constant dense<0.000000e+00> : vector<16xf32>
    %176 = vector.multi_reduction <add>, %175, %cst_79 [1] : vector<16x16xf32> to vector<16xf32>
    %177 = vector.shape_cast %176 : vector<16xf32> to vector<16x1xf32>
    %178 = vector.broadcast %177 : vector<16x1xf32> to vector<16x16xf32>
    %179 = arith.divf %175, %178 : vector<16x16xf32>
    %cst_80 = arith.constant dense<0.000000e+00> : vector<16x8xf32>
    %180 = tpu.matmul %179, %163, %cst_80 {dimension_numbers = #tpu.dot_dimension_numbers<[1], [0], [0], [1], [0, 0, 1, 1], [], []>} : vector<16x16xf32>, vector<16x8xf32>, vector<16x8xf32> -> vector<16x8xf32>
    %181 = vector.extract_strided_slice %136 {offsets = [0, 16], sizes = [16, 8], strides = [1, 1]} : vector<16x32xf32> to vector<16x8xf32>
    %182 = vector.extract_strided_slice %139 {offsets = [0, 16], sizes = [16, 8], strides = [1, 1]} : vector<16x32xf32> to vector<16x8xf32>
    %183 = vector.extract_strided_slice %140 {offsets = [0, 16], sizes = [16, 8], strides = [1, 1]} : vector<16x32xf32> to vector<16x8xf32>
    %cst_81 = arith.constant dense<0.000000e+00> : vector<16x16xf32>
    %184 = tpu.matmul %181, %182, %cst_81 {dimension_numbers = #tpu.dot_dimension_numbers<[1], [1], [0], [0], [0, 0, 1, 0], [], []>} : vector<16x8xf32>, vector<16x8xf32>, vector<16x16xf32> -> vector<16x16xf32>
    %cst_82 = arith.constant 0.353553385 : f32
    %185 = vector.broadcast %cst_82 : f32 to vector<16x16xf32>
    %186 = arith.mulf %184, %185 : vector<16x16xf32>
    %cst_83 = arith.constant -1.000000e+06 : f32
    %187 = vector.broadcast %cst_83 : f32 to vector<16x16xf32>
    %188 = arith.select %12, %186, %187 : vector<16x16xi1>, vector<16x16xf32>
    %cst_84 = arith.constant dense<0xFF800000> : vector<16xf32>
    %189 = vector.multi_reduction <maximumf>, %188, %cst_84 [1] : vector<16x16xf32> to vector<16xf32>
    %cst_85 = arith.constant 0xFF800000 : f32
    %190 = vector.broadcast %cst_85 : f32 to vector<16xf32>
    %191 = arith.maximumf %190, %189 : vector<16xf32>
    %192 = vector.shape_cast %191 : vector<16xf32> to vector<16x1xf32>
    %193 = vector.broadcast %192 : vector<16x1xf32> to vector<16x16xf32>
    %194 = arith.subf %188, %193 : vector<16x16xf32>
    %195 = math.exp %194 : vector<16x16xf32>
    %cst_86 = arith.constant dense<0.000000e+00> : vector<16xf32>
    %196 = vector.multi_reduction <add>, %195, %cst_86 [1] : vector<16x16xf32> to vector<16xf32>
    %197 = vector.shape_cast %196 : vector<16xf32> to vector<16x1xf32>
    %198 = vector.broadcast %197 : vector<16x1xf32> to vector<16x16xf32>
    %199 = arith.divf %195, %198 : vector<16x16xf32>
    %cst_87 = arith.constant dense<0.000000e+00> : vector<16x8xf32>
    %200 = tpu.matmul %199, %183, %cst_87 {dimension_numbers = #tpu.dot_dimension_numbers<[1], [0], [0], [1], [0, 0, 1, 1], [], []>} : vector<16x16xf32>, vector<16x8xf32>, vector<16x8xf32> -> vector<16x8xf32>
    %201 = vector.extract_strided_slice %136 {offsets = [0, 24], sizes = [16, 8], strides = [1, 1]} : vector<16x32xf32> to vector<16x8xf32>
    %202 = vector.extract_strided_slice %139 {offsets = [0, 24], sizes = [16, 8], strides = [1, 1]} : vector<16x32xf32> to vector<16x8xf32>
    %203 = vector.extract_strided_slice %140 {offsets = [0, 24], sizes = [16, 8], strides = [1, 1]} : vector<16x32xf32> to vector<16x8xf32>
    %cst_88 = arith.constant dense<0.000000e+00> : vector<16x16xf32>
    %204 = tpu.matmul %201, %202, %cst_88 {dimension_numbers = #tpu.dot_dimension_numbers<[1], [1], [0], [0], [0, 0, 1, 0], [], []>} : vector<16x8xf32>, vector<16x8xf32>, vector<16x16xf32> -> vector<16x16xf32>
    %cst_89 = arith.constant 0.353553385 : f32
    %205 = vector.broadcast %cst_89 : f32 to vector<16x16xf32>
    %206 = arith.mulf %204, %205 : vector<16x16xf32>
    %cst_90 = arith.constant -1.000000e+06 : f32
    %207 = vector.broadcast %cst_90 : f32 to vector<16x16xf32>
    %208 = arith.select %12, %206, %207 : vector<16x16xi1>, vector<16x16xf32>
    %cst_91 = arith.constant dense<0xFF800000> : vector<16xf32>
    %209 = vector.multi_reduction <maximumf>, %208, %cst_91 [1] : vector<16x16xf32> to vector<16xf32>
    %cst_92 = arith.constant 0xFF800000 : f32
    %210 = vector.broadcast %cst_92 : f32 to vector<16xf32>
    %211 = arith.maximumf %210, %209 : vector<16xf32>
    %212 = vector.shape_cast %211 : vector<16xf32> to vector<16x1xf32>
    %213 = vector.broadcast %212 : vector<16x1xf32> to vector<16x16xf32>
    %214 = arith.subf %208, %213 : vector<16x16xf32>
    %215 = math.exp %214 : vector<16x16xf32>
    %cst_93 = arith.constant dense<0.000000e+00> : vector<16xf32>
    %216 = vector.multi_reduction <add>, %215, %cst_93 [1] : vector<16x16xf32> to vector<16xf32>
    %217 = vector.shape_cast %216 : vector<16xf32> to vector<16x1xf32>
    %218 = vector.broadcast %217 : vector<16x1xf32> to vector<16x16xf32>
    %219 = arith.divf %215, %218 : vector<16x16xf32>
    %cst_94 = arith.constant dense<0.000000e+00> : vector<16x8xf32>
    %220 = tpu.matmul %219, %203, %cst_94 {dimension_numbers = #tpu.dot_dimension_numbers<[1], [0], [0], [1], [0, 0, 1, 1], [], []>} : vector<16x16xf32>, vector<16x8xf32>, vector<16x8xf32> -> vector<16x8xf32>
    %221 = tpu.concatenate %160, %180, %200, %220 in 1 : vector<16x8xf32>, vector<16x8xf32>, vector<16x8xf32>, vector<16x8xf32> -> vector<16x32xf32>
    %cst_95 = arith.constant dense<0.000000e+00> : vector<16x32xf32>
    %222 = tpu.matmul %221, %134, %cst_95 {dimension_numbers = #tpu.dot_dimension_numbers<[1], [0], [0], [1], [0, 0, 1, 1], [], []>} : vector<16x32xf32>, vector<32x32xf32>, vector<16x32xf32> -> vector<16x32xf32>
    %223 = arith.addf %129, %222 : vector<16x32xf32>
    %c0_96 = arith.constant 0 : index
    %c0_97 = arith.constant 0 : index
    %c0_98 = arith.constant 0 : index
    %224 = vector.load %arg11[%c0_96, %c0_97, %c0_98] : memref<1x1x32xf32, #tpu.memory_space<vmem>>, vector<1x1x32xf32>
    %225 = vector.shape_cast %224 : vector<1x1x32xf32> to vector<1x32xf32>
    %c0_99 = arith.constant 0 : index
    %c0_100 = arith.constant 0 : index
    %c0_101 = arith.constant 0 : index
    %226 = vector.load %arg12[%c0_99, %c0_100, %c0_101] : memref<1x1x32xf32, #tpu.memory_space<vmem>>, vector<1x1x32xf32>
    %227 = vector.shape_cast %226 : vector<1x1x32xf32> to vector<1x32xf32>
    %cst_102 = arith.constant dense<0.000000e+00> : vector<16xf32>
    %228 = vector.multi_reduction <add>, %223, %cst_102 [1] : vector<16x32xf32> to vector<16xf32>
    %229 = vector.shape_cast %228 : vector<16xf32> to vector<16x1xf32>
    %cst_103 = arith.constant 3.200000e+01 : f32
    %230 = vector.broadcast %cst_103 : f32 to vector<16x1xf32>
    %231 = arith.divf %229, %230 : vector<16x1xf32>
    %232 = vector.broadcast %231 : vector<16x1xf32> to vector<16x32xf32>
    %233 = arith.subf %223, %232 : vector<16x32xf32>
    %234 = arith.mulf %233, %233 : vector<16x32xf32>
    %cst_104 = arith.constant dense<0.000000e+00> : vector<16xf32>
    %235 = vector.multi_reduction <add>, %234, %cst_104 [1] : vector<16x32xf32> to vector<16xf32>
    %236 = vector.shape_cast %235 : vector<16xf32> to vector<16x1xf32>
    %cst_105 = arith.constant 3.200000e+01 : f32
    %237 = vector.broadcast %cst_105 : f32 to vector<16x1xf32>
    %238 = arith.divf %236, %237 : vector<16x1xf32>
    %239 = vector.broadcast %231 : vector<16x1xf32> to vector<16x32xf32>
    %240 = arith.subf %223, %239 : vector<16x32xf32>
    %cst_106 = arith.constant 9.99999974E-6 : f32
    %241 = vector.broadcast %cst_106 : f32 to vector<16x1xf32>
    %242 = arith.addf %238, %241 : vector<16x1xf32>
    %243 = math.rsqrt %242 : vector<16x1xf32>
    %244 = vector.broadcast %243 : vector<16x1xf32> to vector<16x32xf32>
    %245 = arith.mulf %240, %244 : vector<16x32xf32>
    %246 = vector.broadcast %225 : vector<1x32xf32> to vector<16x32xf32>
    %247 = arith.mulf %245, %246 : vector<16x32xf32>
    %248 = vector.broadcast %227 : vector<1x32xf32> to vector<16x32xf32>
    %249 = arith.addf %247, %248 : vector<16x32xf32>
    %c0_107 = arith.constant 0 : index
    %c0_108 = arith.constant 0 : index
    %c0_109 = arith.constant 0 : index
    %250 = vector.load %arg13[%c0_107, %c0_108, %c0_109] : memref<1x32x64xf32, #tpu.memory_space<vmem>>, vector<1x32x64xf32>
    %251 = vector.shape_cast %250 : vector<1x32x64xf32> to vector<32x64xf32>
    %cst_110 = arith.constant dense<0.000000e+00> : vector<16x64xf32>
    %252 = tpu.matmul %249, %251, %cst_110 {dimension_numbers = #tpu.dot_dimension_numbers<[1], [0], [0], [1], [0, 0, 1, 1], [], []>} : vector<16x32xf32>, vector<32x64xf32>, vector<16x64xf32> -> vector<16x64xf32>
    %c0_111 = arith.constant 0 : index
    %c0_112 = arith.constant 0 : index
    %c0_113 = arith.constant 0 : index
    %253 = vector.load %arg14[%c0_111, %c0_112, %c0_113] : memref<1x1x64xf32, #tpu.memory_space<vmem>>, vector<1x1x64xf32>
    %254 = vector.shape_cast %253 : vector<1x1x64xf32> to vector<1x64xf32>
    %255 = vector.broadcast %254 : vector<1x64xf32> to vector<16x64xf32>
    %256 = arith.addf %252, %255 : vector<16x64xf32>
    %cst_114 = arith.constant 0.000000e+00 : f32
    %257 = vector.broadcast %cst_114 : f32 to vector<16x64xf32>
    %258 = arith.maximumf %256, %257 : vector<16x64xf32>
    %c0_115 = arith.constant 0 : index
    %c0_116 = arith.constant 0 : index
    %c0_117 = arith.constant 0 : index
    %259 = vector.load %arg15[%c0_115, %c0_116, %c0_117] : memref<1x64x32xf32, #tpu.memory_space<vmem>>, vector<1x64x32xf32>
    %260 = vector.shape_cast %259 : vector<1x64x32xf32> to vector<64x32xf32>
    %cst_118 = arith.constant dense<0.000000e+00> : vector<16x32xf32>
    %261 = tpu.matmul %258, %260, %cst_118 {dimension_numbers = #tpu.dot_dimension_numbers<[1], [0], [0], [1], [0, 0, 1, 1], [], []>} : vector<16x64xf32>, vector<64x32xf32>, vector<16x32xf32> -> vector<16x32xf32>
    %c0_119 = arith.constant 0 : index
    %c0_120 = arith.constant 0 : index
    %c0_121 = arith.constant 0 : index
    %262 = vector.load %arg16[%c0_119, %c0_120, %c0_121] : memref<1x1x32xf32, #tpu.memory_space<vmem>>, vector<1x1x32xf32>
    %263 = vector.shape_cast %262 : vector<1x1x32xf32> to vector<1x32xf32>
    %264 = vector.broadcast %263 : vector<1x32xf32> to vector<16x32xf32>
    %265 = arith.addf %261, %264 : vector<16x32xf32>
    %266 = arith.addf %249, %265 : vector<16x32xf32>
    %c0_122 = arith.constant 0 : index
    %c0_123 = arith.constant 0 : index
    %c0_124 = arith.constant 0 : index
    %267 = vector.load %arg17[%c0_122, %c0_123, %c0_124] : memref<1x1x32xf32, #tpu.memory_space<vmem>>, vector<1x1x32xf32>
    %268 = vector.shape_cast %267 : vector<1x1x32xf32> to vector<1x32xf32>
    %c0_125 = arith.constant 0 : index
    %c0_126 = arith.constant 0 : index
    %c0_127 = arith.constant 0 : index
    %269 = vector.load %arg18[%c0_125, %c0_126, %c0_127] : memref<1x1x32xf32, #tpu.memory_space<vmem>>, vector<1x1x32xf32>
    %270 = vector.shape_cast %269 : vector<1x1x32xf32> to vector<1x32xf32>
    %cst_128 = arith.constant dense<0.000000e+00> : vector<16xf32>
    %271 = vector.multi_reduction <add>, %266, %cst_128 [1] : vector<16x32xf32> to vector<16xf32>
    %272 = vector.shape_cast %271 : vector<16xf32> to vector<16x1xf32>
    %cst_129 = arith.constant 3.200000e+01 : f32
    %273 = vector.broadcast %cst_129 : f32 to vector<16x1xf32>
    %274 = arith.divf %272, %273 : vector<16x1xf32>
    %275 = vector.broadcast %274 : vector<16x1xf32> to vector<16x32xf32>
    %276 = arith.subf %266, %275 : vector<16x32xf32>
    %277 = arith.mulf %276, %276 : vector<16x32xf32>
    %cst_130 = arith.constant dense<0.000000e+00> : vector<16xf32>
    %278 = vector.multi_reduction <add>, %277, %cst_130 [1] : vector<16x32xf32> to vector<16xf32>
    %279 = vector.shape_cast %278 : vector<16xf32> to vector<16x1xf32>
    %cst_131 = arith.constant 3.200000e+01 : f32
    %280 = vector.broadcast %cst_131 : f32 to vector<16x1xf32>
    %281 = arith.divf %279, %280 : vector<16x1xf32>
    %282 = vector.broadcast %274 : vector<16x1xf32> to vector<16x32xf32>
    %283 = arith.subf %266, %282 : vector<16x32xf32>
    %cst_132 = arith.constant 9.99999974E-6 : f32
    %284 = vector.broadcast %cst_132 : f32 to vector<16x1xf32>
    %285 = arith.addf %281, %284 : vector<16x1xf32>
    %286 = math.rsqrt %285 : vector<16x1xf32>
    %287 = vector.broadcast %286 : vector<16x1xf32> to vector<16x32xf32>
    %288 = arith.mulf %283, %287 : vector<16x32xf32>
    %289 = vector.broadcast %268 : vector<1x32xf32> to vector<16x32xf32>
    %290 = arith.mulf %288, %289 : vector<16x32xf32>
    %291 = vector.broadcast %270 : vector<1x32xf32> to vector<16x32xf32>
    %292 = arith.addf %290, %291 : vector<16x32xf32>
    %c0_133 = arith.constant 0 : index
    %c0_134 = arith.constant 0 : index
    %293 = vector.load %arg23[%c0_133, %c0_134] : memref<16x32xf32, #tpu.memory_space<vmem>>, vector<16x32xf32>
    tpu.vector_store %arg23[%c0_133, %c0_134], %292 {strides = array<i32>} : memref<16x32xf32, #tpu.memory_space<vmem>>, vector<16x32xf32>,
    %c1_i32 = arith.constant 1 : i32
    %294 = arith.cmpi eq, %arg0, %c1_i32 : i32
    %295 = arith.extui %294 : i1 to i32
    %c0_i32_135 = arith.constant 0 : i32
    %296 = arith.cmpi ne, %295, %c0_i32_135 : i32
    scf.if %296 {
      %c0_136 = arith.constant 0 : index
      %c0_137 = arith.constant 0 : index
      %297 = vector.load %arg19[%c0_136, %c0_137] : memref<32x128xf32, #tpu.memory_space<vmem>>, vector<32x128xf32>
      %cst_138 = arith.constant dense<0.000000e+00> : vector<16x128xf32>
      %298 = tpu.matmul %292, %297, %cst_138 {dimension_numbers = #tpu.dot_dimension_numbers<[1], [0], [0], [1], [0, 0, 1, 1], [], []>} : vector<16x32xf32>, vector<32x128xf32>, vector<16x128xf32> -> vector<16x128xf32>
      %c0_139 = arith.constant 0 : index
      %c0_140 = arith.constant 0 : index
      %299 = vector.load %arg20[%c0_139, %c0_140] : memref<1x128xf32, #tpu.memory_space<vmem>>, vector<1x128xf32>
      %300 = vector.broadcast %299 : vector<1x128xf32> to vector<16x128xf32>
      %301 = arith.addf %298, %300 : vector<16x128xf32>
      %c0_141 = arith.constant 0 : index
      %c0_142 = arith.constant 0 : index
      %302 = vector.load %arg22[%c0_141, %c0_142] : memref<16x128xf32, #tpu.memory_space<vmem>>, vector<16x128xf32>
      tpu.vector_store %arg22[%c0_141, %c0_142], %301 {strides = array<i32>} : memref<16x128xf32, #tpu.memory_space<vmem>>, vector<16x128xf32>,
    } else {
    }
    return
  }
  func.func @transform_0(%arg0: i32) -> (i32, i32) {
    %c0_i32 = arith.constant 0 : i32
    %c0_i32_0 = arith.constant 0 : i32
    %c0_i32_1 = arith.constant 0 : i32
    return %c0_i32, %c0_i32_0 : i32, i32
  }
  func.func @transform_1(%arg0: i32) -> (i32, i32) {
    %c0_i32 = arith.constant 0 : i32
    %c0_i32_0 = arith.constant 0 : i32
    %c0_i32_1 = arith.constant 0 : i32
    return %c0_i32, %c0_i32_0 : i32, i32
  }
  func.func @transform_2(%arg0: i32) -> (i32, i32) {
    %c0_i32 = arith.constant 0 : i32
    %c0_i32_0 = arith.constant 0 : i32
    %c0_i32_1 = arith.constant 0 : i32
    return %c0_i32, %c0_i32_0 : i32, i32
  }
  func.func @transform_3(%arg0: i32) -> (i32, i32) {
    %c0_i32 = arith.constant 0 : i32
    %c0_i32_0 = arith.constant 0 : i32
    %c0_i32_1 = arith.constant 0 : i32
    return %c0_i32, %c0_i32_0 : i32, i32
  }
  func.func @transform_4(%arg0: i32) -> (i32, i32, i32) {
    %c0_i32 = arith.constant 0 : i32
    %c0_i32_0 = arith.constant 0 : i32
    %c0_i32_1 = arith.constant 0 : i32
    return %arg0, %c0_i32, %c0_i32_0 : i32, i32, i32
  }
  func.func @transform_5(%arg0: i32) -> (i32, i32, i32) {
    %c0_i32 = arith.constant 0 : i32
    %c0_i32_0 = arith.constant 0 : i32
    %c0_i32_1 = arith.constant 0 : i32
    return %arg0, %c0_i32, %c0_i32_0 : i32, i32, i32
  }
  func.func @transform_6(%arg0: i32) -> (i32, i32, i32) {
    %c0_i32 = arith.constant 0 : i32
    %c0_i32_0 = arith.constant 0 : i32
    %c0_i32_1 = arith.constant 0 : i32
    return %arg0, %c0_i32, %c0_i32_0 : i32, i32, i32
  }
  func.func @transform_7(%arg0: i32) -> (i32, i32, i32) {
    %c0_i32 = arith.constant 0 : i32
    %c0_i32_0 = arith.constant 0 : i32
    %c0_i32_1 = arith.constant 0 : i32
    return %arg0, %c0_i32, %c0_i32_0 : i32, i32, i32
  }
  func.func @transform_8(%arg0: i32) -> (i32, i32, i32) {
    %c0_i32 = arith.constant 0 : i32
    %c0_i32_0 = arith.constant 0 : i32
    %c0_i32_1 = arith.constant 0 : i32
    return %arg0, %c0_i32, %c0_i32_0 : i32, i32, i32
  }
  func.func @transform_9(%arg0: i32) -> (i32, i32, i32) {
    %c0_i32 = arith.constant 0 : i32
    %c0_i32_0 = arith.constant 0 : i32
    %c0_i32_1 = arith.constant 0 : i32
    return %arg0, %c0_i32, %c0_i32_0 : i32, i32, i32
  }
  func.func @transform_10(%arg0: i32) -> (i32, i32, i32) {
    %c0_i32 = arith.constant 0 : i32
    %c0_i32_0 = arith.constant 0 : i32
    %c0_i32_1 = arith.constant 0 : i32
    return %arg0, %c0_i32, %c0_i32_0 : i32, i32, i32
  }
  func.func @transform_11(%arg0: i32) -> (i32, i32, i32) {
    %c0_i32 = arith.constant 0 : i32
    %c0_i32_0 = arith.constant 0 : i32
    %c0_i32_1 = arith.constant 0 : i32
    return %arg0, %c0_i32, %c0_i32_0 : i32, i32, i32
  }
  func.func @transform_12(%arg0: i32) -> (i32, i32, i32) {
    %c0_i32 = arith.constant 0 : i32
    %c0_i32_0 = arith.constant 0 : i32
    %c0_i32_1 = arith.constant 0 : i32
    return %arg0, %c0_i32, %c0_i32_0 : i32, i32, i32
  }
  func.func @transform_13(%arg0: i32) -> (i32, i32, i32) {
    %c0_i32 = arith.constant 0 : i32
    %c0_i32_0 = arith.constant 0 : i32
    %c0_i32_1 = arith.constant 0 : i32
    return %arg0, %c0_i32, %c0_i32_0 : i32, i32, i32
  }
  func.func @transform_14(%arg0: i32) -> (i32, i32, i32) {
    %c0_i32 = arith.constant 0 : i32
    %c0_i32_0 = arith.constant 0 : i32
    %c0_i32_1 = arith.constant 0 : i32
    return %arg0, %c0_i32, %c0_i32_0 : i32, i32, i32
  }
  func.func @transform_15(%arg0: i32) -> (i32, i32, i32) {
    %c0_i32 = arith.constant 0 : i32
    %c0_i32_0 = arith.constant 0 : i32
    %c0_i32_1 = arith.constant 0 : i32
    return %arg0, %c0_i32, %c0_i32_0 : i32, i32, i32
  }
  func.func @transform_16(%arg0: i32) -> (i32, i32, i32) {
    %c0_i32 = arith.constant 0 : i32
    %c0_i32_0 = arith.constant 0 : i32
    %c0_i32_1 = arith.constant 0 : i32
    return %arg0, %c0_i32, %c0_i32_0 : i32, i32, i32
  }
  func.func @transform_17(%arg0: i32) -> (i32, i32, i32) {
    %c0_i32 = arith.constant 0 : i32
    %c0_i32_0 = arith.constant 0 : i32
    %c0_i32_1 = arith.constant 0 : i32
    return %arg0, %c0_i32, %c0_i32_0 : i32, i32, i32
  }
  func.func @transform_18(%arg0: i32) -> (i32, i32) {
    %c0_i32 = arith.constant 0 : i32
    %c0_i32_0 = arith.constant 0 : i32
    %c0_i32_1 = arith.constant 0 : i32
    return %c0_i32, %c0_i32_0 : i32, i32
  }
  func.func @transform_19(%arg0: i32) -> (i32, i32) {
    %c0_i32 = arith.constant 0 : i32
    %c0_i32_0 = arith.constant 0 : i32
    %c0_i32_1 = arith.constant 0 : i32
    return %c0_i32, %c0_i32_0 : i32, i32
  }
  func.func @transform_20(%arg0: i32) -> (i32, i32, i32) {
    %c0_i32 = arith.constant 0 : i32
    %c0_i32_0 = arith.constant 0 : i32
    %c0_i32_1 = arith.constant 0 : i32
    return %arg0, %c0_i32, %c0_i32_0 : i32, i32, i32
  }
  func.func @transform_21(%arg0: i32) -> (i32, i32) {
    %c0_i32 = arith.constant 0 : i32
    %c0_i32_0 = arith.constant 0 : i32
    %c0_i32_1 = arith.constant 0 : i32
    return %c0_i32, %c0_i32_0 : i32, i32
  }
}

</mosaic_0001>

<bundles_post_ra>
// kernel: tpu_custom_call.1
= control target key start
LH: loop header
LB: loop body
LE: loop exit
PB: predicated region body
PF: predicated region fallthrough
CT: control target
= control target key end

     0   :  { %s6026_s0 = inlined_call_operand.hbm [shape: f32[16,32], index: 0, kind: input, shape index: {}]   ;;  %s6027_s1 = inlined_call_operand.hbm [shape: f32[16,32], index: 1, kind: input, shape index: {}]   ;;  %s6028_s2 = inlined_call_operand.hbm [shape: f32[16,16], index: 2, kind: input, shape index: {}]   ;;  %s6029_s3 = inlined_call_operand.hbm [shape: f32[16,16], index: 3, kind: input, shape index: {}]   ;;  %s6030_s4 = inlined_call_operand.vmem [shape: f32[2,32,96], index: 4, kind: input, shape index: {}]   ;;  %s6031_s5 = inlined_call_operand.vmem [shape: f32[2,32,32], index: 5, kind: input, shape index: {}]   ;;  %s6032_s6 = inlined_call_operand.vmem [shape: f32[2,1,32], index: 6, kind: input, shape index: {}]   ;;  %s6033_s7 = inlined_call_operand.hbm [shape: f32[2,1,32], index: 7, kind: input, shape index: {}]   ;;  %s6034_s8 = inlined_call_operand.vmem [shape: f32[2,32,96], index: 8, kind: input, shape index: {}]   ;;  %s6035_s9 = inlined_call_operand.hbm [shape: f32[2,32,32], index: 9, kind: input, shape index: {}]   ;;  %s6036_s10 = inlined_call_operand.vmem [shape: f32[2,1,32], index: 10, kind: input, shape index: {}]   ;;  %s6037_s11 = inlined_call_operand.vmem [shape: f32[2,1,32], index: 11, kind: input, shape index: {}]   ;;  %s6038_s12 = inlined_call_operand.hbm [shape: f32[2,32,64], index: 12, kind: input, shape index: {}]   ;;  %s6039_s13 = inlined_call_operand.vmem [shape: f32[2,1,64], index: 13, kind: input, shape index: {}]   ;;  %s6040_s14 = inlined_call_operand.vmem [shape: f32[2,64,32], index: 14, kind: input, shape index: {}]   ;;  %s6041_s15 = inlined_call_operand.vmem [shape: f32[2,1,32], index: 15, kind: input, shape index: {}]   ;;  %s6042_s16 = inlined_call_operand.vmem [shape: f32[2,1,32], index: 16, kind: input, shape index: {}]   ;;  %s6043_s17 = inlined_call_operand.vmem [shape: f32[2,1,32], index: 17, kind: input, shape index: {}]   ;;  %s6044_s18 = inlined_call_operand.vmem [shape: f32[32,128], index: 18, kind: input, shape index: {}]   ;;  %s6045_s19 = inlined_call_operand.vmem [shape: f32[1,128], index: 19, kind: input, shape index: {}]   ;;  %s6046_s20 = inlined_call_operand.hbm [shape: f32[2,16,32], index: 20, kind: output, shape index: {0}]   ;;  %s6047_s21 = inlined_call_operand.hbm [shape: f32[16,128], index: 21, kind: output, shape index: {1}]  }
   0x1   :  { %6083 = sst [smem:[#allocation31_spill]] %s6026_s0 }
   0x2   :  { %6084 = sst [smem:[#allocation32_spill]] %s6027_s1 }
   0x3   :  { %6085 = sst [smem:[#allocation33_spill]] %s6028_s2 }
   0x4   :  { %6086 = sst [smem:[#allocation34_spill]] %s6029_s3 }
   0x5   :  { %6087 = sst [smem:[#allocation35_spill]] %s6030_s4 }
   0x6   :  { %6088 = sst [smem:[#allocation36_spill]] %s6031_s5 }
   0x7   :  { %6089 = sst [smem:[#allocation37_spill]] %s6033_s7 }
   0x8   :  { %6090 = sst [smem:[#allocation38_spill]] %s6034_s8 }
   0x9   :  { %6091 = sst [smem:[#allocation39_spill]] %s6035_s9 }
   0xa   :  { %6092 = sst [smem:[#allocation40_spill]] %s6037_s11 }
   0xb   :  { %6093 = sst [smem:[#allocation41_spill]] %s6038_s12 }
   0xc   :  { %6094 = sst [smem:[#allocation42_spill]] %s6039_s13 }
   0xd   :  { %6095 = sst [smem:[#allocation43_spill]] %s6040_s14 }
   0xe   :  { %6096 = sst [smem:[#allocation44_spill]] %s6041_s15 }
   0xf   :  { %6097 = sst [smem:[#allocation45_spill]] %s6042_s16 }
  0x10   :  { %6098 = sst [smem:[#allocation46_spill]] %s6043_s17 }
  0x11   :  { %6099 = sst [smem:[#allocation47_spill]] %s6044_s18 }
  0x12   :  { %6100 = sst [smem:[#allocation48_spill]] %s6045_s19 }
  0x13   :  { %6101 = sst [smem:[#allocation49_spill]] %s6046_s20 }
  0x14   :  { %6102 = sst [smem:[#allocation50_spill]] %s6047_s21 }
  0x15   :  { %27 = vsyncpa [#allocation4], 0 }
  0x16   :  { %28 = vsyncpa [#allocation7], 0 }
  0x17   :  { %29 = vsyncpa [#allocation10], 0 }
  0x18   :  { %30 = vsyncpa [#allocation5], 0 }
  0x19   :  { %32 = vsyncpa [#allocation5 + $0x1], 0 }
  0x1a   :  { %33 = vsyncpa [#allocation16], 0  ;;  %s5178_s2 = smov 0   ;;  %s5180_s25 = smov 0  }
  0x1b   :  { %s5182_s26 = smov 0   ;;  %s5184_s27 = smov 0  }
  0x1c LB: > { %6103 = sst [smem:[#allocation23_spill]] %s5028_s2  ;;  %s5199_s3 = sadd.s32 4294967295, %s5040_s27   ;;  %s5040_s27 = sphi %s5184_s27, %s6180_s27   ;;  %s5036_s26 = sphi %s5182_s26, %s6183_s26   ;;  %s5032_s25 = sphi %s5180_s25, %s6182_s25   ;;  %s5028_s2 = sphi %s5178_s2, %s6181_s2  }
  0x1d   : > { %6104 = sst [smem:[#allocation24_spill]] %s5032_s25  ;;  %s3853_s28 = sadd.s32 4294967294, %s5040_s27  }
  0x1e   : > { %6105 = sst [smem:[#allocation25_spill]] %s5036_s26  ;;  %p221_p0 = scmp.ne.s32.totalorder %s5032_s25, %s5028_s2 }
  0x1f   : > { %6106 = sst [smem:[#allocation26_spill]] %s5040_s27  ;;  %p6057_p1 = scmp.eq.s32.totalorder %s5199_s3, 0 }
  0x20   : > { %p553_p3 = scmp.eq.s32.totalorder %s3853_s28, 1  ;;  %p3854_p5 = scmp.ge.s32.totalorder %s5040_s27, 1 }
  0x21   : > { %p5208_p4 = por %p6057_p1, %p221_p0  ;;  %p581_p7 = scmp.lt.s32.totalorder %s5040_s27, 3 }
  0x22   : > { %p5213_p6 = por %p553_p3, %p221_p0  ;;  %s5042_s30 = smov [#allocation3]  }
  0x23   : > { %s6107_s29 = scalar_select %p5208_p4, 1, 0 }
  0x24   : > { %s6108_s0 = scalar_select %p5213_p6, 1, 0 }
  0x25   : > { %p5219_p9 = pnand %p3854_p5, %p581_p7  ;;  %s593_s5 = sshll.u32 %s5042_s30, 4  ;;  %s5223_s5 = int_to_ptr.vmem [resolvable:$true] %s593_s5 }
  0x26   : > { %6109 = sst [smem:[#allocation27_spill]] %s6108_s0  ;;  %s5235_s23 = sadd.s32 1, %s5040_s27  }
  0x27   : > { %s6110_s4 = scalar_select %p5219_p9, 1, 0 }
  0x28   : > { %p4476_p10 = pneg %p5219_p9  ;;  %6112 = sst [smem:[#allocation28_spill]] %s5235_s23 }
  0x29   : > { %s208_s1 = sadd.s32 1, %s5036_s26  ;;  %s205_s24 = ssub.s32 %s5040_s27, %s5235_s23 }
  0x2a   : > { %p5230_p12 = pnand %p4476_p10, %p6057_p1  ;;  %s6113_s2 = sld [smem:[#allocation31_spill]] }
  0x2c   : > { %s6111_s22 = scalar_select %p5230_p12, 1, 0 }
  0x2d   : > { %p5248_p0 = pneg %p5230_p12 }
  0x2f   : > { %s6115_s18 = scalar_select %p5248_p0, 1, 0 }
  0x30   : > { %s6114_s21 = smov %s6113_s2  ;;  %s4730_s30 = scalar_lea.hbm %s6113_s2, 256 }
  0x31   : > { %p4731_p13 = scmp.ne.s32.totalorder %s6114_s21, %s4730_s30  ;;  %p4737_p7 = scmp.lt.u32.totalorder %s4730_s30, %s6114_s21 }
  0x33   : > { %p4733_p3 = pnand %p5248_p0, %p4731_p13 }
  0x35   : > { %p4734_p5 = pneg %p4733_p3 }
  0x37   : > { %p4739_p10 = pnand %p4737_p7, %p4734_p5 }
  0x39   : > { %4742 = shalt.err (!%p4739_p10)
}
  0x3a   : > { %s4743_s19 = scalar_lea.vmem %s5223_s5, 256  ;;  %p4751_p2 = scmp.lt.s32.totalorder %s5223_s5, %s5223_s5 }
  0x3b   : > { %p4744_p11 = scmp.ne.s32.totalorder %s5223_s5, %s4743_s19  ;;  %p4752_p6 = scmp.lt.s32.totalorder %s4743_s19, %s4743_s19 }
  0x3d   : > { %p4746_p8 = pnand %p4744_p11, %p5248_p0  ;;  %p4753_p13 = por %p4752_p6, %p4751_p2 }
  0x3f   : > { %p4747_p1 = pneg %p4746_p8 }
  0x41   : > { %p4754_p3 = pnand %p4753_p13, %p4747_p1 }
  0x43   : > { %4757 = shalt.err (!%p4754_p3)
}
  0x44   : > { %s6060_s20 = smov 128   ;;  %s6062_s16 = smov 8  }
  0x45   : > { %4479 = dma.hbm_to_vmem [thread:$0]  (!%p5230_p12), %s6114_s21, 256, %s5223_s5, [#allocation4], %s6060_s20, %s6060_s20, %s6062_s16  }
  0x46   : > { %p206_p1 = scmp.eq.s32.totalorder %s205_s24, 0  ;;  %p215_p2 = scmp.ne.s32.totalorder %s5036_s26, %s5032_s25 }
  0x47   : > { %p216_p6 = scmp.eq.s32.totalorder %s5040_s27, 0  ;;  %p4507_p8 = scmp.lt.s32.totalorder %s5040_s27, 2 }
  0x48   : > { %s5277_s0 = scalar_select %p206_p1, %s5036_s26, %s208_s1  }
  0x49   : > { %p217_p11 = por %p216_p6, %p215_p2  ;;  %p6117_p5 = scmp.eq.s32.totalorder %s5199_s3, 1 }
  0x4a   : > { %6116 = sst [smem:[#allocation29_spill]] %s5277_s0  ;;  %s674_s30 = sand.u32 1, %s5040_s27  }
  0x4b   : > { %p5281_p7 = por %p6117_p5, %p215_p2  ;;  %s676_s19 = sand.u32 1, %s5036_s26  }
  0x4c   : > { %s3860_s23 = sshll.u32 %s5040_s27, 4  ;;  %s677_s14 = scalar_lea.vmem [#allocation11], %s676_s19 }
  0x4d   : > { %s6118_s28 = scalar_select %p5281_p7, 1, 0 }
  0x4e   : > { %s684_s15 = sshll.u32 %s677_s14, 4  ;;  %s6120_s7 = sld [smem:[#allocation37_spill]]  ;;  %s5293_s15 = int_to_ptr.vmem [resolvable:$true] %s684_s15 }
  0x4f   : > { %6119 = sst [smem:[#allocation30_spill]] %s6118_s28  ;;  %p5295_p10 = pnand %p4507_p8, %p217_p11 }
  0x50   : > { %s5299_s24 = sshll.u32 %s676_s19, 5  ;;  %s5304_s13 = scalar_lea.sflag [#allocation4], %s674_s30 }
  0x51   : > { %s6121_s1 = scalar_select %p5295_p10, 1, 0 }
  0x52   : > { %s703_s14 = scalar_lea.vmem [#allocation12], %s5299_s24  ;;  %p5310_p3 = pneg %p5295_p10 }
  0x53   : > { %s5302_s2 = sshll.u32 %s703_s14, 4  ;;  %s5335_s2 = int_to_ptr.vmem [resolvable:$true] %s5302_s2 }
  0x54   : > { %s5291_s5 = scalar_lea.hbm %s6120_s7, %s3860_s23  ;;  %s4763_s16 = scalar_lea.hbm %s6120_s7, 32 }
  0x55   : > { %s4758_s23 = scalar_lea.hbm %s5291_s5, 16  ;;  %p4764_p6 = scmp.lt.u32.totalorder %s5291_s5, %s6120_s7 }
  0x56   : > { %p4759_p13 = scmp.ne.s32.totalorder %s5291_s5, %s4758_s23  ;;  %p4765_p8 = scmp.lt.u32.totalorder %s4763_s16, %s4758_s23 }
  0x57   : > { %p4767_p5 = scmp.lt.u32.totalorder %s4758_s23, %s5291_s5 }
  0x58   : > { %p4761_p1 = pnand %p5310_p3, %p4759_p13  ;;  %p4766_p11 = por %p4765_p8, %p4764_p6 }
  0x5a   : > { %p4762_p2 = pneg %p4761_p1  ;;  %p4768_p7 = por %p4767_p5, %p4766_p11 }
  0x5c   : > { %p4769_p4 = pnand %p4768_p7, %p4762_p2 }
  0x5e   : > { %4772 = shalt.err (!%p4769_p4)
}
  0x5f   : > { %s4773_s30 = scalar_lea.vmem %s5293_s15, 16  ;;  %s5045_s20 = smov [#allocation11]  }
  0x60   : > { %p4774_p13 = scmp.ne.s32.totalorder %s5293_s15, %s4773_s30  ;;  %s4778_s19 = sshll.u32 %s5045_s20, 4  ;;  %s4779_s19 = int_to_ptr.vmem [resolvable:$false] %s4778_s19 }
  0x61   : > { %s4780_s21 = scalar_lea.vmem %s4779_s19, 32  ;;  %p4781_p12 = scmp.lt.s32.totalorder %s5293_s15, %s4779_s19 }
  0x62   : > { %p4776_p1 = pnand %p4774_p13, %p5310_p3  ;;  %p4782_p0 = scmp.lt.s32.totalorder %s4780_s21, %s4773_s30 }
  0x64   : > { %p4777_p9 = pneg %p4776_p1  ;;  %p4783_p6 = por %p4782_p0, %p4781_p12 }
  0x66   : > { %p4784_p8 = pnand %p4783_p6, %p4777_p9 }
  0x68   : > { %4787 = shalt.err (!%p4784_p8)
}
  0x69   : > { %4492 = dma.hbm_to_vmem [thread:$0]  (!%p5295_p10), %s5291_s5, 16, %s5293_s15, %s5304_s13  }
  0x6a   : > { %s736_s16 = scalar_lea.vmem [#allocation13], %s5299_s24  ;;  %s5046_s14 = smov [#allocation6]  }
  0x6b   : > { %s743_s23 = sshll.u32 %s736_s16, 4  ;;  %s606_s30 = sshll.u32 %s5046_s14, 4  ;;  %s5338_s23 = int_to_ptr.vmem [resolvable:$true] %s743_s23  ;;  %s607_s30 = int_to_ptr.vmem [resolvable:$true] %s606_s30 }
  0x6c   : > { %s6077_s20 = sshll.u32 %s5040_s27, 9  ;;  %s6123_s9 = sld [smem:[#allocation39_spill]] }
  0x6d   : > { %s6124_s28 = sld [smem:[#allocation32_spill]]  ;;  %p6125_p9 = scmp.ne.s32.totalorder %s6115_s18, 0 }
  0x72   : > { %s5346_s7 = scalar_lea.hbm %s6123_s9, %s6077_s20 }
  0x73   : > { %s4788_s15 = scalar_lea.hbm %s6124_s28, 256 }
  0x74   : > { %p4789_p4 = scmp.ne.s32.totalorder %s6124_s28, %s4788_s15  ;;  %p4795_p7 = scmp.lt.u32.totalorder %s4788_s15, %s6124_s28 }
  0x76   : > { %p4791_p12 = pnand %p4789_p4, %p6125_p9 }
  0x78   : > { %p4792_p0 = pneg %p4791_p12 }
  0x7a   : > { %p4797_p2 = pnand %p4795_p7, %p4792_p0 }
  0x7c   : > { %4800 = shalt.err (!%p4797_p2)
}
  0x7d   : > { %s4801_s14 = scalar_lea.vmem %s607_s30, 256  ;;  %p4809_p1 = scmp.lt.s32.totalorder %s607_s30, %s607_s30 }
  0x7e   : > { %p4802_p11 = scmp.ne.s32.totalorder %s607_s30, %s4801_s14  ;;  %p4810_p6 = scmp.lt.s32.totalorder %s4801_s14, %s4801_s14 }
  0x80   : > { %p4804_p5 = pnand %p4802_p11, %p6125_p9  ;;  %p4811_p8 = por %p4810_p6, %p4809_p1 }
  0x82   : > { %p4805_p13 = pneg %p4804_p5 }
  0x84   : > { %p4812_p10 = pnand %p4811_p8, %p4805_p13 }
  0x86   : > { %4815 = shalt.err (!%p4812_p10)
}
  0x87   : > { %p6126_p4 = scmp.ne.s32.totalorder %s6111_s22, 0  ;;  %s6127_s11 = smov 8  }
  0x88   : > { %s6128_s26 = smov 128   ;;  %s4816_s21 = scalar_lea.hbm %s5346_s7, 512 }
  0x89   : > { %4482 = dma.hbm_to_vmem [thread:$0]  (!%p6126_p4), %s6124_s28, 256, %s607_s30, [#allocation7], %s6128_s26, %s6128_s26, %s6127_s11  }
  0x8a   : > { %p4817_p12 = scmp.ne.s32.totalorder %s5346_s7, %s4816_s21  ;;  %s4821_s24 = scalar_lea.hbm %s6123_s9, 1024 }
  0x8b   : > { %p4822_p10 = scmp.lt.u32.totalorder %s5346_s7, %s6123_s9  ;;  %p4823_p2 = scmp.lt.u32.totalorder %s4821_s24, %s4816_s21 }
  0x8c   : > { %p4819_p0 = pnand %p4817_p12, %p5310_p3  ;;  %p4825_p5 = scmp.lt.u32.totalorder %s4816_s21, %s5346_s7 }
  0x8d   : > { %p4824_p11 = por %p4823_p2, %p4822_p10 }
  0x8e   : > { %p4820_p7 = pneg %p4819_p0 }
  0x8f   : > { %p4826_p13 = por %p4825_p5, %p4824_p11 }
  0x91   : > { %p4827_p1 = pnand %p4826_p13, %p4820_p7 }
  0x93   : > { %4830 = shalt.err (!%p4827_p1)
}
  0x94   : > { %s4831_s30 = scalar_lea.vmem %s5335_s2, 512  ;;  %s5047_s0 = smov [#allocation12]  }
  0x95   : > { %p4832_p6 = scmp.ne.s32.totalorder %s5335_s2, %s4831_s30  ;;  %s4836_s19 = sshll.u32 %s5047_s0, 4  ;;  %s4837_s19 = int_to_ptr.vmem [resolvable:$false] %s4836_s19 }
  0x96   : > { %s4838_s15 = scalar_lea.vmem %s4837_s19, 1024  ;;  %p4839_p0 = scmp.lt.s32.totalorder %s5335_s2, %s4837_s19 }
  0x97   : > { %p4834_p8 = pnand %p4832_p6, %p5310_p3  ;;  %p4840_p4 = scmp.lt.s32.totalorder %s4838_s15, %s4831_s30 }
  0x99   : > { %p4835_p12 = pneg %p4834_p8  ;;  %p4841_p10 = por %p4840_p4, %p4839_p0 }
  0x9b   : > { %p4842_p2 = pnand %p4841_p10, %p4835_p12 }
  0x9d   : > { %4845 = shalt.err (!%p4842_p2)
}
  0x9e   : > { %p6129_p7 = scmp.ne.s32.totalorder %s6121_s1, 0  ;;  %s5048_s21 = smov [#allocation8]  }
  0x9f   : > { %s619_s5 = sshll.u32 %s5048_s21, 4  ;;  %s5049_s24 = smov [#allocation9]   ;;  %s620_s5 = int_to_ptr.vmem [resolvable:$true] %s619_s5 }
  0xa0   : > { %4495 = dma.hbm_to_vmem [thread:$0]  (!%p6129_p7), %s5346_s7, 512, %s5335_s2, %s5304_s13, %s6128_s26, %s6128_s26, %s6127_s11  }
  0xa1   : > { %s632_s16 = sshll.u32 %s5049_s24, 4  ;;  %s6130_s0 = sld [smem:[#allocation33_spill]]  ;;  %s5394_s16 = int_to_ptr.vmem [resolvable:$true] %s632_s16 }
  0xa7   : > { %s4846_s19 = scalar_lea.hbm %s6130_s0, 256 }
  0xa8   : > { %p4847_p4 = scmp.ne.s32.totalorder %s6130_s0, %s4846_s19  ;;  %p4853_p13 = scmp.lt.u32.totalorder %s4846_s19, %s6130_s0 }
  0xaa   : > { %p4849_p11 = pnand %p4847_p4, %p6125_p9 }
  0xac   : > { %p4850_p5 = pneg %p4849_p11 }
  0xae   : > { %p4855_p1 = pnand %p4853_p13, %p4850_p5 }
  0xb0   : > { %4858 = shalt.err (!%p4855_p1)
}
  0xb1   : > { %s4859_s2 = scalar_lea.vmem %s620_s5, 256  ;;  %p4867_p0 = scmp.lt.s32.totalorder %s620_s5, %s620_s5 }
  0xb2   : > { %p4860_p6 = scmp.ne.s32.totalorder %s620_s5, %s4859_s2  ;;  %p4868_p10 = scmp.lt.s32.totalorder %s4859_s2, %s4859_s2 }
  0xb4   : > { %p4862_p8 = pnand %p4860_p6, %p6125_p9  ;;  %p4869_p2 = por %p4868_p10, %p4867_p0 }
  0xb6   : > { %p4863_p12 = pneg %p4862_p8 }
  0xb8   : > { %p4870_p7 = pnand %p4869_p2, %p4863_p12 }
  0xba   : > { %4873 = shalt.err (!%p4870_p7)
}
  0xbb   : > { %p6131_p4 = scmp.ne.s32.totalorder %s6111_s22, 0  ;;  %s6132_s14 = sld [smem:[#allocation34_spill]] }
  0xbd   : > { %4485 = dma.hbm_to_vmem [thread:$0]  (!%p6131_p4), %s6130_s0, 256, %s620_s5, [#allocation7], %s6128_s26, %s6128_s26, %s6127_s11  }
  0xc1   : > { %s4874_s30 = scalar_lea.hbm %s6132_s14, 256 }
  0xc2   : > { %p4875_p11 = scmp.ne.s32.totalorder %s6132_s14, %s4874_s30  ;;  %p4881_p13 = scmp.lt.u32.totalorder %s4874_s30, %s6132_s14 }
  0xc4   : > { %p4877_p7 = pnand %p4875_p11, %p6125_p9 }
  0xc6   : > { %p4878_p5 = pneg %p4877_p7 }
  0xc8   : > { %p4883_p1 = pnand %p4881_p13, %p4878_p5 }
  0xca   : > { %4886 = shalt.err (!%p4883_p1)
}
  0xcb   : > { %s4887_s5 = scalar_lea.vmem %s5394_s16, 256  ;;  %p4895_p0 = scmp.lt.s32.totalorder %s5394_s16, %s5394_s16 }
  0xcc   : > { %p4888_p6 = scmp.ne.s32.totalorder %s5394_s16, %s4887_s5  ;;  %p4896_p10 = scmp.lt.s32.totalorder %s4887_s5, %s4887_s5 }
  0xce   : > { %p4890_p8 = pnand %p4888_p6, %p6125_p9  ;;  %p4897_p2 = por %p4896_p10, %p4895_p0 }
  0xd0   : > { %p4891_p12 = pneg %p4890_p8 }
  0xd2   : > { %p4898_p11 = pnand %p4897_p2, %p4891_p12 }
  0xd4   : > { %4901 = shalt.err (!%p4898_p11)
}
  0xd5   : > { %4488 = dma.hbm_to_vmem [thread:$0]  (!%p6131_p4), %s6132_s14, 256, %s5394_s16, [#allocation10], %s6128_s26, %s6128_s26, %s6127_s11  }
  0xd6   : > { %s6133_s18 = sshll.u32 %s5040_s27, 9  ;;  %s6134_s12 = sld [smem:[#allocation41_spill]] }
  0xdc   : > { %s5448_s30 = scalar_lea.hbm %s6134_s12, %s6133_s18  ;;  %s4907_s7 = scalar_lea.hbm %s6134_s12, 1024 }
  0xdd   : > { %s4902_s22 = scalar_lea.hbm %s5448_s30, 512  ;;  %p4908_p4 = scmp.lt.u32.totalorder %s5448_s30, %s6134_s12 }
  0xde   : > { %p4903_p9 = scmp.ne.s32.totalorder %s5448_s30, %s4902_s22  ;;  %p4909_p13 = scmp.lt.u32.totalorder %s4907_s7, %s4902_s22 }
  0xdf   : > { %p4911_p6 = scmp.lt.u32.totalorder %s4902_s22, %s5448_s30 }
  0xe0   : > { %p4905_p7 = pnand %p4903_p9, %p5310_p3  ;;  %p4910_p1 = por %p4909_p13, %p4908_p4 }
  0xe2   : > { %p4906_p5 = pneg %p4905_p7  ;;  %p4912_p8 = por %p4911_p6, %p4910_p1 }
  0xe4   : > { %p4913_p12 = pnand %p4912_p8, %p4906_p5 }
  0xe6   : > { %4916 = shalt.err (!%p4913_p12)
}
  0xe7   : > { %s4917_s5 = scalar_lea.vmem %s5338_s23, 512  ;;  %s5050_s9 = smov [#allocation13]  }
  0xe8   : > { %p4918_p0 = scmp.ne.s32.totalorder %s5338_s23, %s4917_s5  ;;  %s4922_s20 = sshll.u32 %s5050_s9, 4  ;;  %s4923_s20 = int_to_ptr.vmem [resolvable:$false] %s4922_s20 }
  0xe9   : > { %s4924_s18 = scalar_lea.vmem %s4923_s20, 1024  ;;  %p4925_p11 = scmp.lt.s32.totalorder %s5338_s23, %s4923_s20 }
  0xea   : > { %p4920_p10 = pnand %p4918_p0, %p5310_p3  ;;  %p4926_p9 = scmp.lt.s32.totalorder %s4924_s18, %s4917_s5 }
  0xec   : > { %p4921_p2 = pneg %p4920_p10  ;;  %p4927_p7 = por %p4926_p9, %p4925_p11 }
  0xee   : > { %p4928_p4 = pnand %p4927_p7, %p4921_p2 }
  0xf0   : > { %4931 = shalt.err (!%p4928_p4)
}
  0xf1   : > { %p6135_p5 = scmp.ne.s32.totalorder %s6121_s1, 0  ;;  %p6136_p3 = scmp.ne.s32.totalorder %s6110_s4, 0 }
  0xf2   : > { %p6137_p13 = scmp.eq.s32.totalorder (!%p6136_p3), %s5199_s3, 0 }
  0xf3   : > { %4498 = dma.hbm_to_vmem [thread:$0]  (!%p6135_p5), %s5448_s30, 512, %s5338_s23, %s5304_s13, %s6128_s26, %s6128_s26, %s6127_s11  }
  0xf4   : > { %787 = sbr.rel (%p6136_p3) target bundleno = 7003 (0x1b5b), region = 100 }
  0xfb   : > { %5003 = dma.done.wait (%p6137_p13), [#allocation4], 256   ;;  %p6138_p1 = pmov %p6137_p13 }
  0xfd   : > { %5005 = vsyncadd (%p6138_p1), [#allocation4], 4294967040  ;;  %p6139_p6 = pmov %p6138_p1 }
  0xfe   : > { %p6140_p8 = pmov %p6138_p1 }
  0xff   : > { %5007 = dma.done.wait (%p6139_p6), [#allocation7], 512  }
 0x100   : > { %5009 = vsyncadd (%p6140_p8), [#allocation7], 4294966784  ;;  %p6141_p12 = pmov %p6138_p1 }
 0x101   : > { %p6142_p0 = pmov %p6138_p1 }
 0x102   : > { %5011 = dma.done.wait (%p6141_p12), [#allocation10], 256  }
 0x103   : > { %5013 = vsyncadd (%p6142_p0), [#allocation10], 4294967040  ;;  %s805_s4 = sand.u32 1, %s5199_s3   ;;  %s5491_s1 = sand.u32 1, %s5032_s25  }
 0x104   : > { %s806_s13 = scalar_lea.sflag [#allocation4], %s805_s4  ;;  %p6143_p10 = scmp.ne.s32.totalorder %s6107_s29, 0 }
 0x106   : > { %5015 = dma.done.wait (%p6143_p10), %s806_s13, 1040  }
 0x107   : > { %5017 = vsyncadd (%p6143_p10), %s806_s13, 4294966256  ;;  %s3872_s23 = sshll.u32 %s5491_s1, 5  ;;  %s3874_s11 = sshll.u32 %s5491_s1, 4 }
 0x108   : > { %p935_p2 = scmp.lt.s32.totalorder %s5199_s3, 1  ;;  %s6144_s15 = sld [smem:[#allocation35_spill]] }
 0x109   : > { %s6145_s5 = sld [smem:[#allocation36_spill]]  ;;  %s6146_s8 = sld [smem:[#allocation38_spill]] }
 0x10a   : > { %s5502_s26 = scalar_select %p935_p2, %s5199_s3, 1 }
 0x10b   : > { %s6149_s28 = sld [smem:[#allocation44_spill]]  ;;  %s6150_s18 = sld [smem:[#allocation43_spill]] }
 0x10c   : > { %s3967_s29 = sshll.u32 %s5502_s26, 5  ;;  %s3970_s16 = sshll.u32 %s5502_s26, 6 }
 0x10d   : > { %s6151_s0 = sld [smem:[#allocation45_spill]]  ;;  %s6152_s24 = sld [smem:[#allocation46_spill]] }
 0x10e   : > { %s939_s7 = scalar_lea.vmem %s6144_s15, %s3967_s29  ;;  %s6148_s15 = sld [smem:[#allocation42_spill]] }
 0x10f   : > { %s5515_s9 = scalar_lea.vmem %s6145_s5, %s3967_s29  ;;  %s5520_s4 = scalar_lea.vmem %s6146_s8, %s3967_s29 }
 0x110   : > { %s5552_s22 = scalar_lea.vmem [#allocation12], %s3872_s23  ;;  %s5554_s19 = scalar_lea.vmem [#allocation13], %s3872_s23 }
 0x111   : > { %s969_s25 = scalar_lea.vmem %s6149_s28, %s5502_s26  ;;  %s5542_s8 = scalar_lea.vmem %s6150_s18, %s3970_s16 }
 0x112   : > { %p6153_p11 = scmp.ne.s32.totalorder %s5199_s3, 0 }
 0x113   : > { %s972_s27 = scalar_lea.vmem %s6151_s0, %s5502_s26  ;;  %s975_s12 = scalar_lea.vmem %s6152_s24, %s5502_s26  ;;  %v980_v0 = vld [vmem:[#allocation3] sm:$0xff] (!%p6153_p11)  ;;  %vm982_vm0 = vcmask (!%p6153_p11), 261120   ;;  %v981_v1 = vld [vmem:[#allocation3 + $0x8] sm:$0xff] (!%p6153_p11) }
 0x114   : > { %s961_s14 = scalar_lea.vmem %s6148_s15, %s5502_s26  ;;  %s5556_s15 = scalar_lea.vmem [#allocation14], %s3874_s11  ;;  %983 = vst.msk [vmem:[#allocation2] sm:$0xff] (!%p6153_p11), %vm982_vm0, %v980_v0  ;;  %984 = vst.msk [vmem:[#allocation2 + $0x8] sm:$0xff] (!%p6153_p11), %vm982_vm0, %v981_v1 }
 0x115   : > { %979 = sbr.rel (%p6153_p11) target bundleno = 284 (0x11c), region = 132 }
 0x11c PF: > { %v998_v2 = vld [vmem:[%s939_s7] sm:$0xff]  ;;  %v999_v3 = vld [vmem:[%s939_s7 + $0x8] sm:$0xff]  ;;  %v1000_v4 = vld [vmem:[%s939_s7 + $0x10] sm:$0xff]  ;;  %vm987_vm1 = vcmask 261120   ;;  %vm1093_vm2 = vcmask 64512   ;;  %s5051_s28 = smov 120   ;;  %s6156_s30 = scalar_lea.vmem %s6032_s6, %s5502_s26 }
 0x11d   : > { %v4296_v5 = vpack.c.bf16 %v999_v3, %v998_v2  ;;  %v1001_v6 = vld [vmem:[%s939_s7 + $0x18] sm:$0xff]  ;;  %v5560_v7 = vld [vmem:[#allocation2] sm:$0xff]  ;;  %v5562_v8 = vld [vmem:[#allocation2 + $0x8] sm:$0xff]  ;;  %s5052_s0 = smov 96   ;;  %s5053_s23 = smov 88   ;;  %vm1181_vm5 = vcmask 130048  }
 0x11e   : > { %v4300_v9 = vpack.c.bf16 %v1001_v6, %v1000_v4  ;;  %988 = vst.msk [vmem:[%s5556_s15] sm:$0xff] %vm987_vm1, %v5560_v7  ;;  %4096 = vmatprep.mubr.msk.f32.mxu1 %vm987_vm1, %v5560_v7  ;;  %989 = vst.msk [vmem:[%s5556_s15 + $0x8] sm:$0xff] %vm987_vm1, %v5562_v8  ;;  %v5610_v24 = vld [vmem:[#allocation8 + $0x8] sm:$0xff]  ;;  %v5612_v25 = vld [vmem:[#allocation8] sm:$0xff]  ;;  %s5054_s11 = smov 64   ;;  %s5055_s7 = smov 80  }
 0x11f   : > { %4297 = vmatprep.subr.bf16.mxu1 %v4296_v5  ;;  %vm5594_vm3 = vmpackc.low %vm1093_vm2, %vm1093_vm2  ;;  %vm993_vm4 = vcmp.gt.f32.partialorder %v5610_v24, 0.5  ;;  %vm992_vm6 = vcmp.gt.f32.partialorder %v5612_v25, 0.5  ;;  %s5056_s16 = smov 56   ;;  %s5057_s2 = smov 112   ;;  %vm1931_vm7 = vcmask 195584   ;;  %vm3328_vm10 = vcmask 523264  }
 0x120   : > { %4299 = vmatpush3.bf16.msra.mxu1 %v4296_v5  ;;  %s5058_s5 = smov 72   ;;  %s5059_s20 = smov 104  }
 0x121   : > { %4301 = vmatprep.subr.bf16.mxu1 %v4300_v9  ;;  %s5060_s29 = smov 48   ;;  %s5061_s18 = smov 8  }
 0x122   : > { %s5062_s17 = smov 40   ;;  %s5063_s13 = smov 16  }
 0x123   : > { %s5064_s21 = smov 24   ;;  %s6157_s24 = scalar_lea.vmem [#allocation11], %s5491_s1 }
 0x124   : > { %4303 = vmatpush3.bf16.msra.mxu1 %v4300_v9  ;;  %p3954_p9 = scmp.ne.s32.totalorder %s5199_s3, 1 }
 0x127   : > { %4097 = vmatmul.mubr.msk.f32.vlgmr.msra.gmra.mrb[0].mxu1 %vm987_vm1, %v5562_v8 }
 0x1fa   : > { %v5574_v10 = vpop.f32.mrb[0].mxu1 }
 0x1fb   : > { %v5576_v11 = vpop.f32.mrb[1].mxu1 }
 0x1fc   : > { %1291 = vrot.lane.b32.xlu1 %v5576_v11, %s5051_s28  ;;  %4103 = vmatprep.mubr.msk.f32.mxu1 %vm1093_vm2, %v5576_v11  ;;  %v5584_v12 = vpack.i.bf16 %v5574_v10, %v5576_v11 }
 0x1fe   : > { %4570 = vrot.lane.b32.xlu0 %v5584_v12, %s5052_s0 }
 0x200   : > { %1293 = vrot.lane.b32.xlu1 %v5574_v10, %s5051_s28 }
 0x202   : > { %4575 = vrot.lane.b32.xlu0 %v5584_v12, %s5053_s23 }
 0x26e   : > { %v1292_v22 = vpop.permute.xlu1 %1291 }
 0x270   : > { %v4571_v13 = vpop.permute.xlu0 %4570 }
 0x271   : > { %v4573_v14 = vunpack.i.h.bf16 %v4571_v13  ;;  %v4572_v15 = vunpack.i.l.bf16 %v4571_v13 }
 0x272   : > { %v1294_v23 = vpop.permute.xlu1 %1293 }
 0x273   : > { %v4304_v17 = vpack.c.bf16 %v4573_v14, %v4572_v15 }
 0x274   : > { %v4576_v18 = vpop.permute.xlu0 %4575 }
 0x275   : > { %v4578_v19 = vunpack.i.h.bf16 %v4576_v18  ;;  %v4577_v20 = vunpack.i.l.bf16 %v4576_v18  ;;  %4306 = vmatprep.subr.msk.bf16.mxu1 %vm5594_vm3, %v4304_v17 }
 0x276   : > { %4309 = vmatpush3.bf16.xpose.msk.msra.mxu1 %vm5594_vm3, %v4304_v17 }
 0x277   : > { %v4314_v21 = vpack.c.bf16 %v4578_v19, %v4577_v20 }
 0x279   : > { %4316 = vmatprep.subr.msk.bf16.mxu1 %vm5594_vm3, %v4314_v21 }
 0x27d   : > { %4104 = vmatmul.mubr.msk.f32.vlgmr.msra.gmra.mrb[2].mxu1 %vm1093_vm2, %v5574_v10 }
 0x27e   : > { %4319 = vmatpush3.bf16.xpose.msk.msra.mxu1 %vm5594_vm3, %v4314_v21  ;;  %4117 = vmatprep.mubr.msk.f32.mxu1 %vm1093_vm2, %v1292_v22 }
 0x285   : > { %4118 = vmatmul.mubr.msk.f32.vlgmr.msra.gmra.mrb[4].mxu1 %vm1093_vm2, %v1294_v23 }
 0x350   : > { %v4105_v26 = vpop.f32.mrb[2].mxu1 }
 0x351   : > { %v1178_v27 = vmul.f32 0.35355338, %v4105_v26  ;;  %v1168_v28 = vpop.f32.mrb[3].mxu1 }
 0x352   : > { %v1177_v29 = vmul.f32 0.35355338, %v1168_v28 }
 0x353   : > { %v1180_v30 = vsel %vm993_vm4, %v1178_v27, -1000000.0 }
 0x354   : > { %v1185_v31 = vsel %vm1181_vm5, %v1180_v30, -inf  ;;  %v1179_v32 = vsel %vm992_vm6, %v1177_v29, -1000000.0 }
 0x355   : > { %1186 = vmax.xlane.f32.xlu1 %v1185_v31  ;;  %v1182_v33 = vsel %vm1181_vm5, %v1179_v32, -inf }
 0x356   : > { %1183 = vmax.xlane.f32.xlu0 %v1182_v33 }
 0x358   : > { %v4119_v34 = vpop.f32.mrb[4].mxu1 }
 0x359   : > { %v1373_v35 = vpop.f32.mrb[5].mxu1  ;;  %v1383_v36 = vmul.f32 0.35355338, %v4119_v34 }
 0x35a   : > { %v1382_v37 = vmul.f32 0.35355338, %v1373_v35 }
 0x35b   : > { %v1385_v40 = vsel %vm993_vm4, %v1383_v36, -1000000.0 }
 0x35c   : > { %v1384_v38 = vsel %vm992_vm6, %v1382_v37, -1000000.0  ;;  %v1389_v41 = vsel %vm1181_vm5, %v1385_v40, -inf }
 0x35d   : > { %v1386_v39 = vsel %vm1181_vm5, %v1384_v38, -inf }
 0x35e   : > { %1387 = vmax.xlane.f32.xlu0 %v1386_v39 }
 0x362   : > { %1390 = vmax.xlane.f32.xlu0 %v1389_v41 }
 0x366   : > { %4580 = vrot.lane.b32.xlu1 %v5584_v12, %s5054_s11  ;;  %s6159_s11 = sld [smem:[#allocation40_spill]] }
 0x3e2   : > { %v1187_v42 = vpop.xlane.xlu1 %1186 }
 0x3e3   : > { %v1189_v43 = vsub.f32 %v1180_v30, %v1187_v42  ;;  %v1184_v44 = vpop.xlane.xlu0 %1183 }
 0x3e4   : > { %v1188_v45 = vsub.f32 %v1179_v32, %v1184_v44 }
 0x3e5   : > { %v1192_v46 = vmul.f32 1.442695, %v1189_v43 }
 0x3e6   : > { %v1190_v47 = vmul.f32 1.442695, %v1188_v45  ;;  %v4581_v48 = vpop.permute.xlu1 %4580 }
 0x3e7   : > { %4654 = vpow2.f32 %v1192_v46  ;;  %v4583_v49 = vunpack.i.h.bf16 %v4581_v48  ;;  %v4582_v50 = vunpack.i.l.bf16 %v4581_v48 }
 0x3e8   : > { %4656 = vpow2.f32 %v1190_v47 }
 0x3e9   : > { %v4310_v51 = vpack.c.bf16 %v4583_v49, %v4582_v50 }
 0x3eb   : > { %4311 = vmatprep.subr.bf16.mxu0 %v4310_v51  ;;  %v1388_v52 = vpop.xlane.xlu0 %1387 }
 0x3ec   : > { %4313 = vmatpush3.bf16.msra.mxu0 %v4310_v51  ;;  %v1392_v62 = vsub.f32 %v1384_v38, %v1388_v52 }
 0x3ee   : > { %v1394_v63 = vmul.f32 1.442695, %v1392_v62 }
 0x3ef   : > { %v1391_v53 = vpop.xlane.xlu0 %1390 }
 0x3f0   : > { %v1393_v54 = vsub.f32 %v1385_v40, %v1391_v53 }
 0x3f1   : > { %v4655_v55 = vpop.eup %4654 }
 0x3f2   : > { %v4657_v56 = vpop.eup %4656  ;;  %v1396_v57 = vmul.f32 1.442695, %v1393_v54  ;;  %v1197_v58 = vsel %vm1181_vm5, %v4655_v55, 0.0 }
 0x3f3   : > { %1198 = vadd.xlane.f32.xlu0 %v1197_v58  ;;  %v1194_v59 = vsel %vm1181_vm5, %v4657_v56, 0.0 }
 0x3f4   : > { %4658 = vpow2.f32 %v1396_v57  ;;  %1195 = vadd.xlane.f32.xlu1 %v1194_v59 }
 0x3f5   : > { %4660 = vpow2.f32 %v1394_v63 }
 0x3fe   : > { %v4659_v60 = vpop.eup %4658 }
 0x3ff   : > { %v1401_v61 = vsel %vm1181_vm5, %v4659_v60, 0.0  ;;  %v4661_v0 = vpop.eup %4660 }
 0x400   : > { %1402 = vadd.xlane.f32.xlu0 %v1401_v61  ;;  %v1398_v1 = vsel %vm1181_vm5, %v4661_v0, 0.0 }
 0x405   : > { %4590 = vrot.lane.b32.xlu1 %v5584_v12, %s5055_s7 }
 0x416   : > { %4585 = vrot.lane.b32.xlu0 %v5584_v12, %s5056_s16 }
 0x41a   : > { %1497 = vrot.lane.b32.xlu0 %v5574_v10, %s5057_s2 }
 0x429   : > { %1399 = vadd.xlane.f32.xlu1 %v1398_v1 }
 0x43a   : > { %1495 = vrot.lane.b32.xlu1 %v5576_v11, %s5057_s2 }
 0x480   : > { %v1199_v2 = vpop.xlane.xlu0 %1198 }
 0x481   : > { %4662 = vrcp.f32 %v1199_v2  ;;  %v1196_v3 = vpop.xlane.xlu1 %1195 }
 0x482   : > { %4664 = vrcp.f32 %v1196_v3 }
 0x485   : > { %v4591_v14 = vpop.permute.xlu1 %4590 }
 0x486   : > { %v4593_v17 = vunpack.i.h.bf16 %v4591_v14  ;;  %v4592_v18 = vunpack.i.l.bf16 %v4591_v14 }
 0x488   : > { %v4324_v22 = vpack.c.bf16 %v4593_v17, %v4592_v18 }
 0x48b   : > { %v4663_v4 = vpop.eup %4662 }
 0x48c   : > { %v4665_v5 = vpop.eup %4664  ;;  %v1203_v13 = vmul.f32 %v4663_v4, %v4655_v55 }
 0x48d   : > { %v1403_v6 = vpop.xlane.xlu0 %1402  ;;  %v1201_v9 = vmul.f32 %v4665_v5, %v4657_v56 }
 0x48e   : > { %4666 = vrcp.f32 %v1403_v6 }
 0x48f   : > { %4110 = vmatprep.mubr.msk.f32.mxu0 %vm1181_vm5, %v1201_v9 }
 0x490   : > { %4111 = vmatmul.mubr.msk.f32.vlgmr.msra.gmra.mrb[0].mxu0 %vm1181_vm5, %v1203_v13 }
 0x491   : > { %v4586_v15 = vpop.permute.xlu0 %4585 }
 0x492   : > { %v4588_v19 = vunpack.i.h.bf16 %v4586_v15  ;;  %v4587_v20 = vunpack.i.l.bf16 %v4586_v15 }
 0x494   : > { %v4320_v21 = vpack.c.bf16 %v4588_v19, %v4587_v20 }
 0x495   : > { %v1498_v31 = vpop.permute.xlu0 %1497 }
 0x496   : > { %4321 = vmatprep.subr.bf16.mxu0 %v4320_v21 }
 0x497   : > { %4323 = vmatpush3.bf16.msra.mxu0 %v4320_v21 }
 0x498   : > { %4326 = vmatprep.subr.msk.bf16.mxu0 %vm5594_vm3, %v4324_v22  ;;  %v4667_v26 = vpop.eup %4666 }
 0x499   : > { %v1407_v29 = vmul.f32 %v4667_v26, %v4659_v60 }
 0x4b6   : > { %v1400_v23 = vpop.xlane.xlu1 %1399 }
 0x4b7   : > { %4668 = vrcp.f32 %v1400_v23 }
 0x4ba   : > { %v1496_v30 = vpop.permute.xlu1 %1495 }
 0x4c1   : > { %v4669_v27 = vpop.eup %4668 }
 0x4c2   : > { %v1405_v28 = vmul.f32 %v4669_v27, %v4661_v0 }
 0x4c4   : > { %4124 = vmatprep.mubr.msk.f32.mxu0 %vm1181_vm5, %v1405_v28 }
 0x4c5   : > { %4125 = vmatmul.mubr.msk.f32.vlgmr.msra.gmra.mrb[2].mxu0 %vm1181_vm5, %v1407_v29 }
 0x4c6   : > { %4329 = vmatpush3.bf16.xpose.msk.msra.mxu0 %vm5594_vm3, %v4324_v22  ;;  %4131 = vmatprep.mubr.msk.f32.mxu0 %vm1093_vm2, %v1496_v30 }
 0x4cd   : > { %4132 = vmatmul.mubr.msk.f32.vlgmr.msra.gmra.mrb[4].mxu0 %vm1093_vm2, %v1498_v31 }
 0x563   : > { %v5650_v32 = vpop.f32.mrb[0].mxu0 }
 0x564   : > { %v5652_v33 = vpop.f32.mrb[1].mxu0 }
 0x598   : > { %v5654_v34 = vpop.f32.mrb[2].mxu0 }
 0x599   : > { %v5656_v35 = vpop.f32.mrb[3].mxu0 }
 0x5a0   : > { %v4133_v36 = vpop.f32.mrb[4].mxu0 }
 0x5a1   : > { %v1587_v37 = vmul.f32 0.35355338, %v4133_v36  ;;  %v1577_v38 = vpop.f32.mrb[5].mxu0 }
 0x5a2   : > { %v1586_v39 = vmul.f32 0.35355338, %v1577_v38 }
 0x5a3   : > { %v1589_v40 = vsel %vm993_vm4, %v1587_v37, -1000000.0 }
 0x5a4   : > { %v1593_v41 = vsel %vm1181_vm5, %v1589_v40, -inf  ;;  %v1588_v42 = vsel %vm992_vm6, %v1586_v39, -1000000.0 }
 0x5a5   : > { %1594 = vmax.xlane.f32.xlu0 %v1593_v41  ;;  %v1590_v43 = vsel %vm1181_vm5, %v1588_v42, -inf  ;;  %v1002_v41 = vld [vmem:[%s5515_s9] sm:$0xff] }
 0x5a6   : > { %1591 = vmax.xlane.f32.xlu1 %v1590_v43  ;;  %v1004_v43 = vld [vmem:[%s5515_s9 + $0x10] sm:$0xff] }
 0x632   : > { %v1595_v44 = vpop.xlane.xlu0 %1594 }
 0x633   : > { %v1597_v45 = vsub.f32 %v1589_v40, %v1595_v44  ;;  %v1592_v46 = vpop.xlane.xlu1 %1591 }
 0x634   : > { %v1596_v47 = vsub.f32 %v1588_v42, %v1592_v46  ;;  %v1003_v42 = vld [vmem:[%s5515_s9 + $0x8] sm:$0xff] }
 0x635   : > { %v1600_v48 = vmul.f32 1.442695, %v1597_v45  ;;  %v4344_v44 = vpack.c.bf16 %v1003_v42, %v1002_v41  ;;  %v1005_v45 = vld [vmem:[%s5515_s9 + $0x18] sm:$0xff] }
 0x636   : > { %v1598_v49 = vmul.f32 1.442695, %v1596_v47  ;;  %v4348_v46 = vpack.c.bf16 %v1005_v45, %v1004_v43 }
 0x637   : > { %4670 = vpow2.f32 %v1600_v48 }
 0x638   : > { %4672 = vpow2.f32 %v1598_v49 }
 0x641   : > { %v4671_v50 = vpop.eup %4670 }
 0x642   : > { %v4673_v51 = vpop.eup %4672  ;;  %v1605_v52 = vsel %vm1181_vm5, %v4671_v50, 0.0 }
 0x643   : > { %1606 = vadd.xlane.f32.xlu1 %v1605_v52  ;;  %v1602_v53 = vsel %vm1181_vm5, %v4673_v51, 0.0 }
 0x644   : > { %1603 = vadd.xlane.f32.xlu0 %v1602_v53 }
 0x654   : > { %4600 = vrot.lane.b32.xlu1 %v5584_v12, %s5058_s5 }
 0x658   : > { %1699 = vrot.lane.b32.xlu1 %v5576_v11, %s5059_s20 }
 0x65a   : > { %4595 = vrot.lane.b32.xlu0 %v5584_v12, %s5060_s29 }
 0x65e   : > { %1701 = vrot.lane.b32.xlu0 %v5574_v10, %s5059_s20 }
 0x6d0   : > { %v1607_v54 = vpop.xlane.xlu1 %1606 }
 0x6d1   : > { %4674 = vrcp.f32 %v1607_v54  ;;  %v1604_v55 = vpop.xlane.xlu0 %1603 }
 0x6d2   : > { %4676 = vrcp.f32 %v1604_v55 }
 0x6d4   : > { %v4601_v56 = vpop.permute.xlu1 %4600 }
 0x6d5   : > { %v4596_v57 = vpop.permute.xlu0 %4595  ;;  %v4603_v58 = vunpack.i.h.bf16 %v4601_v56  ;;  %v4602_v59 = vunpack.i.l.bf16 %v4601_v56 }
 0x6d6   : > { %v4598_v60 = vunpack.i.h.bf16 %v4596_v57  ;;  %v4597_v61 = vunpack.i.l.bf16 %v4596_v57 }
 0x6d7   : > { %v4334_v63 = vpack.c.bf16 %v4603_v58, %v4602_v59 }
 0x6d8   : > { %v4330_v62 = vpack.c.bf16 %v4598_v60, %v4597_v61  ;;  %v1700_v2 = vpop.permute.xlu1 %1699 }
 0x6d9   : > { %v1702_v3 = vpop.permute.xlu0 %1701 }
 0x6da   : > { %4331 = vmatprep.subr.bf16.mxu1 %v4330_v62 }
 0x6db   : > { %v4675_v11 = vpop.eup %4674  ;;  %4333 = vmatpush3.bf16.msra.mxu1 %v4330_v62 }
 0x6dc   : > { %v4677_v0 = vpop.eup %4676  ;;  %4336 = vmatprep.subr.msk.bf16.mxu1 %vm5594_vm3, %v4334_v63  ;;  %v1611_v1 = vmul.f32 %v4675_v11, %v4671_v50 }
 0x6dd   : > { %v1609_v10 = vmul.f32 %v4677_v0, %v4673_v51  ;;  %v2064_v0 = vld [vmem:[%s5520_s4] sm:$0xff] }
 0x6df   : > { %4138 = vmatprep.mubr.msk.f32.mxu1 %vm1181_vm5, %v1609_v10  ;;  %v2065_v10 = vld [vmem:[%s5520_s4 + $0x8] sm:$0xff] }
 0x6e0   : > { %4139 = vmatmul.mubr.msk.f32.vlgmr.msra.gmra.mrb[6].mxu1 %vm1181_vm5, %v1611_v1  ;;  %v4609_v1 = vpack.i.bf16 %v2065_v10, %v2064_v0 }
 0x6e1   : > { %4145 = vmatprep.mubr.msk.f32.mxu1 %vm1093_vm2, %v1700_v2 }
 0x6e4   : > { %4339 = vmatpush3.bf16.xpose.msk.msra.mxu1 %vm5594_vm3, %v4334_v63 }
 0x6eb   : > { %4146 = vmatmul.mubr.msk.f32.vlgmr.msra.gmra.mrb[8].mxu1 %vm1093_vm2, %v1702_v3 }
 0x7b3   : > { %v4140_v4 = vpop.f32.mrb[6].mxu1 }
 0x7b4   : > { %v1690_v5 = vpop.f32.mrb[7].mxu1 }
 0x7be   : > { %v4147_v6 = vpop.f32.mrb[8].mxu1 }
 0x7bf   : > { %v1791_v9 = vmul.f32 0.35355338, %v4147_v6  ;;  %v1781_v13 = vpop.f32.mrb[9].mxu1 }
 0x7c0   : > { %v1790_v14 = vmul.f32 0.35355338, %v1781_v13 }
 0x7c1   : > { %v1793_v15 = vsel %vm993_vm4, %v1791_v9, -1000000.0 }
 0x7c2   : > { %v1797_v17 = vsel %vm1181_vm5, %v1793_v15, -inf  ;;  %v1792_v18 = vsel %vm992_vm6, %v1790_v14, -1000000.0 }
 0x7c3   : > { %1798 = vmax.xlane.f32.xlu0 %v1797_v17  ;;  %v1794_v19 = vsel %vm1181_vm5, %v1792_v18, -inf }
 0x7c4   : > { %1795 = vmax.xlane.f32.xlu1 %v1794_v19  ;;  %v2066_v19 = vld [vmem:[%s5520_s4 + $0x10] sm:$0xff] }
 0x850   : > { %v1799_v20 = vpop.xlane.xlu0 %1798 }
 0x851   : > { %v1801_v21 = vsub.f32 %v1793_v15, %v1799_v20  ;;  %v1796_v22 = vpop.xlane.xlu1 %1795  ;;  %v2067_v20 = vld [vmem:[%s5520_s4 + $0x18] sm:$0xff] }
 0x852   : > { %v1800_v23 = vsub.f32 %v1792_v18, %v1796_v22  ;;  %v4614_v22 = vpack.i.bf16 %v2067_v20, %v2066_v19 }
 0x853   : > { %v1804_v26 = vmul.f32 1.442695, %v1801_v21 }
 0x854   : > { %v1802_v27 = vmul.f32 1.442695, %v1800_v23  ;;  %v2062_v23 = vld [vmem:[#allocation6] sm:$0xff] }
 0x855   : > { %4678 = vpow2.f32 %v1804_v26  ;;  %v4352_v26 = vpack.c.bf16 %v2065_v10, %v2064_v0 }
 0x856   : > { %4680 = vpow2.f32 %v1802_v27  ;;  %v4356_v27 = vpack.c.bf16 %v2067_v20, %v2066_v19 }
 0x857   : > { %4353 = vmatprep.subr.bf16.mxu1 %v4352_v26 }
 0x858   : > { %4355 = vmatpush3.bf16.msra.mxu1 %v4352_v26 }
 0x859   : > { %4357 = vmatprep.subr.bf16.mxu1 %v4356_v27 }
 0x85c   : > { %4359 = vmatpush3.bf16.msra.mxu1 %v4356_v27 }
 0x85f   : > { %v4679_v28 = vpop.eup %4678 }
 0x860   : > { %v4681_v24 = vpop.eup %4680  ;;  %v1809_v29 = vsel %vm1181_vm5, %v4679_v28, 0.0 }
 0x861   : > { %1810 = vadd.xlane.f32.xlu1 %v1809_v29  ;;  %v1806_v25 = vsel %vm1181_vm5, %v4681_v24, 0.0 }
 0x862   : > { %1807 = vadd.xlane.f32.xlu0 %v1806_v25 }
 0x872   : > { %1905 = vrot.lane.b32.xlu1 %v5656_v35, %s5061_s18 }
 0x876   : > { %1907 = vrot.lane.b32.xlu1 %v5654_v34, %s5061_s18 }
 0x878   : > { %4605 = vrot.lane.b32.xlu0 %v5584_v12, %s5062_s17 }
 0x87a   : > { %1915 = vrot.lane.b32.xlu1 %v4140_v4, %s5063_s13 }
 0x87c   : > { %1913 = vrot.lane.b32.xlu0 %v1690_v5, %s5063_s13 }
 0x8ee   : > { %v1811_v30 = vpop.xlane.xlu1 %1810 }
 0x8ef   : > { %4682 = vrcp.f32 %v1811_v30  ;;  %v1808_v31 = vpop.xlane.xlu0 %1807 }
 0x8f0   : > { %4684 = vrcp.f32 %v1808_v31 }
 0x8f2   : > { %v1906_v49 = vpop.permute.xlu1 %1905 }
 0x8f3   : > { %v4606_v36 = vpop.permute.xlu0 %4605  ;;  %v1927_v53 = vsel %vm1093_vm2, %v5652_v33, %v1906_v49 }
 0x8f4   : > { %v4608_v35 = vunpack.i.h.bf16 %v4606_v36  ;;  %v4607_v37 = vunpack.i.l.bf16 %v4606_v36 }
 0x8f6   : > { %v4340_v34 = vpack.c.bf16 %v4608_v35, %v4607_v37  ;;  %v1908_v50 = vpop.permute.xlu1 %1907 }
 0x8f7   : > { %v1914_v52 = vpop.permute.xlu0 %1913  ;;  %v1928_v55 = vsel %vm1093_vm2, %v5650_v32, %v1908_v50 }
 0x8f8   : > { %4341 = vmatprep.subr.bf16.mxu0 %v4340_v34  ;;  %v1929_v56 = vsel %vm1181_vm5, %v1927_v53, %v1914_v52 }
 0x8f9   : > { %v4683_v38 = vpop.eup %4682  ;;  %4343 = vmatpush3.bf16.msra.mxu0 %v4340_v34 }
 0x8fa   : > { %v4685_v12 = vpop.eup %4684  ;;  %v1815_v40 = vmul.f32 %v4683_v38, %v4679_v28  ;;  %4345 = vmatprep.subr.bf16.mxu0 %v4344_v44  ;;  %v1916_v51 = vpop.permute.xlu1 %1915  ;;  %v2063_v38 = vld [vmem:[#allocation6 + $0x8] sm:$0xff] }
 0x8fb   : > { %v1813_v39 = vmul.f32 %v4685_v12, %v4681_v24  ;;  %v1930_v58 = vsel %vm1181_vm5, %v1928_v55, %v1916_v51 }
 0x8fd   : > { %4152 = vmatprep.mubr.msk.f32.mxu0 %vm1181_vm5, %v1813_v39 }
 0x8fe   : > { %4153 = vmatmul.mubr.msk.f32.vlgmr.msra.gmra.mrb[6].mxu0 %vm1181_vm5, %v1815_v40  ;;  %v3912_v40 = vld [vmem:[%s6156_s30] ss:$0 sm:$0xff]  ;;  %s6165_s30 = sld [smem:[#allocation47_spill]] (!%p3954_p9) }
 0x8ff   : > { %4347 = vmatpush3.bf16.msra.mxu0 %v4344_v44  ;;  %v3913_v44 = vld [vmem:[%s6157_s24] ss:$0 sm:$0xff] }
 0x900   : > { %4349 = vmatprep.subr.bf16.mxu0 %v4348_v46 }
 0x903   : > { %4351 = vmatpush3.bf16.msra.mxu0 %v4348_v46 }
 0x9d1   : > { %v4154_v47 = vpop.f32.mrb[6].mxu0 }
 0x9d2   : > { %1923 = vrot.lane.b32.xlu1 %v4154_v47, %s5064_s21  ;;  %v1894_v48 = vpop.f32.mrb[7].mxu0 }
 0x9d3   : > { %1921 = vrot.lane.b32.xlu0 %v1894_v48, %s5064_s21 }
 0xa44   : > { %v1924_v54 = vpop.permute.xlu1 %1923 }
 0xa45   : > { %v1922_v57 = vpop.permute.xlu0 %1921  ;;  %v1933_v60 = vsel %vm1931_vm7, %v1930_v58, %v1924_v54 }
 0xa46   : > { %v1932_v59 = vsel %vm1931_vm7, %v1929_v56, %v1922_v57 }
 0xa47   : > { %4163 = vmatprep.mubr.msk.f32.mxu0 %vm987_vm1, %v1932_v59 }
 0xa48   : > { %4164 = vmatmul.mubr.msk.f32.vlgmr.msra.gmra.mrb[8].mxu0 %vm987_vm1, %v1933_v60  ;;  %v5769_v60 = vld [vmem:[#allocation9 + $0x8] sm:$0xff] }
 0xa49   : > { %4185 = vmatprep.mubr.msk.f32.mxu0 %vm987_vm1, %v2062_v23  ;;  %vm997_vm8 = vcmp.gt.f32.partialorder %v5769_v60, 0.5 }
 0xb1b   : > { %v4165_v33 = vpop.f32.mrb[8].mxu0 }
 0xb1c   : > { %v2016_v61 = vadd.f32 %v4165_v33, %v5562_v8  ;;  %v2006_v62 = vpop.f32.mrb[9].mxu0  ;;  %v5771_v33 = vld [vmem:[#allocation9] sm:$0xff] }
 0xb1d   : > { %v2015_v32 = vadd.f32 %v2006_v62, %v5560_v7  ;;  %vm996_vm9 = vcmp.gt.f32.partialorder %v5771_v33, 0.5 }
 0xb1e   : > { %v2022_v63 = vsel %vm987_vm1, %v2016_v61, 0.0 }
 0xb1f   : > { %2023 = vadd.xlane.f32.xlu1 %v2022_v63  ;;  %v2019_v11 = vsel %vm987_vm1, %v2015_v32, 0.0 }
 0xb20   : > { %2020 = vadd.xlane.f32.xlu0 %v2019_v11 }
 0xb30   : > { %4610 = vrot.lane.b32.xlu1 %v4609_v1, %s5052_s0 }
 0xbac   : > { %v2024_v2 = vpop.xlane.xlu1 %2023 }
 0xbad   : > { %v2027_v3 = vmul.f32 0.03125, %v2024_v2  ;;  %v2021_v4 = vpop.xlane.xlu0 %2020 }
 0xbae   : > { %v2026_v8 = vmul.f32 0.03125, %v2021_v4 }
 0xbaf   : > { %v2029_v5 = vsub.f32 %v2016_v61, %v2027_v3 }
 0xbb0   : > { %v2028_v6 = vsub.f32 %v2015_v32, %v2026_v8  ;;  %v4611_v15 = vpop.permute.xlu1 %4610 }
 0xbb1   : > { %v2031_v7 = vmul.f32 %v2029_v5, %v2029_v5  ;;  %v4613_v17 = vunpack.i.h.bf16 %v4611_v15  ;;  %v4612_v18 = vunpack.i.l.bf16 %v4611_v15 }
 0xbb2   : > { %v2030_v13 = vmul.f32 %v2028_v6, %v2028_v6 }
 0xbb3   : > { %v2035_v9 = vsel %vm987_vm1, %v2031_v7, 0.0  ;;  %v4360_v21 = vpack.c.bf16 %v4613_v17, %v4612_v18 }
 0xbb4   : > { %2036 = vadd.xlane.f32.xlu0 %v2035_v9  ;;  %v2032_v14 = vsel %vm987_vm1, %v2030_v13, 0.0 }
 0xbb5   : > { %4361 = vmatprep.subr.bf16.mxu0 %v4360_v21 }
 0xbb6   : > { %4363 = vmatpush3.bf16.msra.mxu0 %v4360_v21 }
 0xbb8   : > { %2033 = vadd.xlane.f32.xlu0 %v2032_v14 }
 0xbce   : > { %4615 = vrot.lane.b32.xlu0 %v4614_v22, %s5052_s0 }
 0xc41   : > { %v2037_v28 = vpop.xlane.xlu0 %2036 }
 0xc42   : > { %v2039_v24 = vmul.f32 0.03125, %v2037_v28 }
 0xc44   : > { %v2041_v29 = vadd.f32 1e-05, %v2039_v24 }
 0xc45   : > { %v2034_v25 = vpop.xlane.xlu0 %2033 }
 0xc46   : > { %4686 = vrsqrt.f32 %v2041_v29  ;;  %v2038_v30 = vmul.f32 0.03125, %v2034_v25 }
 0xc48   : > { %v2040_v31 = vadd.f32 1e-05, %v2038_v30 }
 0xc49   : > { %v4616_v36 = vpop.permute.xlu0 %4615 }
 0xc4a   : > { %4688 = vrsqrt.f32 %v2040_v31  ;;  %v4618_v35 = vunpack.i.h.bf16 %v4616_v36  ;;  %v4617_v37 = vunpack.i.l.bf16 %v4616_v36 }
 0xc4c   : > { %v4364_v34 = vpack.c.bf16 %v4618_v35, %v4617_v37 }
 0xc4e   : > { %4365 = vmatprep.subr.bf16.mxu0 %v4364_v34 }
 0xc4f   : > { %4367 = vmatpush3.bf16.msra.mxu0 %v4364_v34 }
 0xc50   : > { %v4687_v12 = vpop.eup %4686 }
 0xc51   : > { %v2045_v39 = vmul.f32 %v4687_v12, %v2029_v5 }
 0xc52   : > { %4186 = vmatmul.mubr.msk.f32.vlgmr.msra.gmra.mrb[10].mxu0 %vm987_vm1, %v2063_v38 }
 0xc53   : > { %v2053_v43 = vmul.f32 %v3912_v40, %v2045_v39 }
 0xc54   : > { %v4689_v41 = vpop.eup %4688 }
 0xc55   : > { %v2044_v42 = vmul.f32 %v4689_v41, %v2028_v6  ;;  %v5737_v47 = vadd.f32 %v3913_v44, %v2053_v43 }
 0xc57   : > { %v2052_v45 = vmul.f32 %v3912_v40, %v2044_v42 }
 0xc59   : > { %v5735_v46 = vadd.f32 %v3913_v44, %v2052_v45 }
 0xc5b   : > { %4174 = vmatprep.mubr.msk.f32.mxu1 %vm987_vm1, %v5735_v46 }
 0xc5c   : > { %4175 = vmatmul.mubr.msk.f32.vlgmr.msra.gmra.mrb[10].mxu1 %vm987_vm1, %v5737_v47 }
 0xd25   : > { %v4187_v48 = vpop.f32.mrb[10].mxu0 }
 0xd26   : > { %v2241_v49 = vpop.f32.mrb[11].mxu0 }
 0xd27   : > { %v5743_v50 = vpack.i.bf16 %v4187_v48, %v2241_v49  ;;  %v4368_v51 = vpack.c.bf16 %v4187_v48, %v2241_v49 }
 0xd29   : > { %4620 = vrot.lane.b32.xlu1 %v5743_v50, %s5051_s28  ;;  %4370 = vmatprep.subr.msk.bf16.mxu1 %vm5594_vm3, %v4368_v51 }
 0xd2a   : > { %4373 = vmatpush3.bf16.xpose.msk.msra.mxu1 %vm5594_vm3, %v4368_v51 }
 0xd2f   : > { %v5751_v52 = vpop.f32.mrb[10].mxu1 }
 0xd30   : > { %2452 = vrot.lane.b32.xlu0 %v5751_v52, %s5051_s28  ;;  %v5755_v53 = vpop.f32.mrb[11].mxu1 }
 0xd31   : > { %4192 = vmatprep.mubr.msk.f32.mxu1 %vm1093_vm2, %v5755_v53  ;;  %2450 = vrot.lane.b32.xlu1 %v5755_v53, %s5051_s28  ;;  %s6158_s28 = scalar_lea.vmem %s6036_s10, %s5502_s26 }
 0xd32   : > { %4193 = vmatmul.mubr.msk.f32.vlgmr.msra.gmra.mrb[12].mxu1 %vm1093_vm2, %v5751_v52 }
 0xd9b   : > { %v4621_v54 = vpop.permute.xlu1 %4620 }
 0xd9c   : > { %v4623_v55 = vunpack.i.h.bf16 %v4621_v54  ;;  %v4622_v56 = vunpack.i.l.bf16 %v4621_v54 }
 0xd9e   : > { %v4378_v57 = vpack.c.bf16 %v4623_v55, %v4622_v56 }
 0xda0   : > { %4380 = vmatprep.subr.msk.bf16.mxu1 %vm5594_vm3, %v4378_v57 }
 0xda1   : > { %4383 = vmatpush3.bf16.xpose.msk.msra.mxu1 %vm5594_vm3, %v4378_v57 }
 0xda2   : > { %v2453_v59 = vpop.permute.xlu0 %2452 }
 0xda3   : > { %v2451_v58 = vpop.permute.xlu1 %2450 }
 0xda4   : > { %4206 = vmatprep.mubr.msk.f32.mxu1 %vm1093_vm2, %v2451_v58 }
 0xda8   : > { %4207 = vmatmul.mubr.msk.f32.vlgmr.msra.gmra.mrb[14].mxu1 %vm1093_vm2, %v2453_v59 }
 0xe05   : > { %v4194_v61 = vpop.f32.mrb[12].mxu1 }
 0xe06   : > { %v2338_v62 = vmul.f32 0.35355338, %v4194_v61  ;;  %v2328_v32 = vpop.f32.mrb[13].mxu1 }
 0xe07   : > { %v2337_v63 = vmul.f32 0.35355338, %v2328_v32 }
 0xe08   : > { %v2340_v11 = vsel %vm997_vm8, %v2338_v62, -1000000.0 }
 0xe09   : > { %v2344_v0 = vsel %vm1181_vm5, %v2340_v11, -inf  ;;  %v2339_v10 = vsel %vm996_vm9, %v2337_v63, -1000000.0 }
 0xe0a   : > { %2345 = vmax.xlane.f32.xlu0 %v2344_v0  ;;  %v2341_v1 = vsel %vm1181_vm5, %v2339_v10, -inf }
 0xe0b   : > { %2342 = vmax.xlane.f32.xlu1 %v2341_v1 }
 0xe7b   : > { %v4208_v2 = vpop.f32.mrb[14].mxu1 }
 0xe7c   : > { %v2542_v3 = vmul.f32 0.35355338, %v4208_v2  ;;  %v2532_v4 = vpop.f32.mrb[15].mxu1 }
 0xe7d   : > { %v2541_v8 = vmul.f32 0.35355338, %v2532_v4 }
 0xe7e   : > { %v2544_v5 = vsel %vm997_vm8, %v2542_v3, -1000000.0 }
 0xe7f   : > { %v2548_v6 = vsel %vm1181_vm5, %v2544_v5, -inf  ;;  %v2543_v7 = vsel %vm996_vm9, %v2541_v8, -1000000.0 }
 0xe80   : > { %2549 = vmax.xlane.f32.xlu1 %v2548_v6  ;;  %v2545_v9 = vsel %vm1181_vm5, %v2543_v7, -inf }
 0xe81   : > { %2546 = vmax.xlane.f32.xlu0 %v2545_v9 }
 0xe97   : > { %v2346_v13 = vpop.xlane.xlu0 %2345 }
 0xe98   : > { %v2348_v14 = vsub.f32 %v2340_v11, %v2346_v13  ;;  %v2343_v15 = vpop.xlane.xlu1 %2342 }
 0xe99   : > { %v2347_v17 = vsub.f32 %v2339_v10, %v2343_v15 }
 0xe9a   : > { %v2351_v18 = vmul.f32 1.442695, %v2348_v14 }
 0xe9b   : > { %v2349_v19 = vmul.f32 1.442695, %v2347_v17 }
 0xe9c   : > { %4690 = vpow2.f32 %v2351_v18 }
 0xe9d   : > { %4692 = vpow2.f32 %v2349_v19 }
 0xea6   : > { %v4691_v20 = vpop.eup %4690 }
 0xea7   : > { %v4693_v21 = vpop.eup %4692  ;;  %v2356_v22 = vsel %vm1181_vm5, %v4691_v20, 0.0 }
 0xea8   : > { %2357 = vadd.xlane.f32.xlu1 %v2356_v22  ;;  %v2353_v23 = vsel %vm1181_vm5, %v4693_v21, 0.0 }
 0xea9   : > { %2354 = vadd.xlane.f32.xlu0 %v2353_v23 }
 0xf0d   : > { %v2550_v26 = vpop.xlane.xlu1 %2549 }
 0xf0e   : > { %v2552_v27 = vsub.f32 %v2544_v5, %v2550_v26  ;;  %v2547_v28 = vpop.xlane.xlu0 %2546 }
 0xf0f   : > { %v2551_v24 = vsub.f32 %v2543_v7, %v2547_v28 }
 0xf10   : > { %v2555_v29 = vmul.f32 1.442695, %v2552_v27 }
 0xf11   : > { %v2553_v25 = vmul.f32 1.442695, %v2551_v24 }
 0xf12   : > { %4694 = vpow2.f32 %v2555_v29 }
 0xf13   : > { %4696 = vpow2.f32 %v2553_v25 }
 0xf1c   : > { %v4695_v30 = vpop.eup %4694 }
 0xf1d   : > { %v4697_v31 = vpop.eup %4696  ;;  %v2560_v36 = vsel %vm1181_vm5, %v4695_v30, 0.0 }
 0xf1e   : > { %2561 = vadd.xlane.f32.xlu1 %v2560_v36  ;;  %v2557_v35 = vsel %vm1181_vm5, %v4697_v31, 0.0 }
 0xf1f   : > { %2558 = vadd.xlane.f32.xlu0 %v2557_v35 }
 0xf2f   : > { %4630 = vrot.lane.b32.xlu1 %v5743_v50, %s5053_s23 }
 0xf33   : > { %4635 = vrot.lane.b32.xlu1 %v5743_v50, %s5057_s2 }
 0xf35   : > { %4625 = vrot.lane.b32.xlu0 %v5743_v50, %s5052_s0  ;;  %v2358_v12 = vpop.xlane.xlu1 %2357 }
 0xf36   : > { %v2355_v37 = vpop.xlane.xlu0 %2354 }
 0xf37   : > { %4698 = vrcp.f32 %v2355_v37  ;;  %2656 = vrot.lane.b32.xlu1 %v5751_v52, %s5057_s2 }
 0xf38   : > { %4700 = vrcp.f32 %v2358_v12 }
 0xf39   : > { %2654 = vrot.lane.b32.xlu0 %v5755_v53, %s5057_s2 }
 0xf41   : > { %v4699_v34 = vpop.eup %4698 }
 0xf42   : > { %v2360_v38 = vmul.f32 %v4699_v34, %v4693_v21  ;;  %v4701_v54 = vpop.eup %4700 }
 0xf43   : > { %v2362_v59 = vmul.f32 %v4701_v54, %v4691_v20 }
 0xf44   : > { %4199 = vmatprep.mubr.msk.f32.mxu0 %vm1181_vm5, %v2360_v38 }
 0xfab   : > { %v2562_v39 = vpop.xlane.xlu1 %2561 }
 0xfac   : > { %v2559_v40 = vpop.xlane.xlu0 %2558 }
 0xfad   : > { %4702 = vrcp.f32 %v2559_v40 }
 0xfae   : > { %4704 = vrcp.f32 %v2562_v39 }
 0xfaf   : > { %v4631_v41 = vpop.permute.xlu1 %4630 }
 0xfb0   : > { %v4626_v42 = vpop.permute.xlu0 %4625  ;;  %v4633_v43 = vunpack.i.h.bf16 %v4631_v41  ;;  %v4632_v44 = vunpack.i.l.bf16 %v4631_v41 }
 0xfb1   : > { %v4628_v45 = vunpack.i.h.bf16 %v4626_v42  ;;  %v4627_v48 = vunpack.i.l.bf16 %v4626_v42 }
 0xfb2   : > { %v4384_v55 = vpack.c.bf16 %v4633_v43, %v4632_v44 }
 0xfb3   : > { %v4374_v49 = vpack.c.bf16 %v4628_v45, %v4627_v48  ;;  %v4636_v51 = vpop.permute.xlu1 %4635 }
 0xfb4   : > { %v4638_v56 = vunpack.i.h.bf16 %v4636_v51  ;;  %v4637_v57 = vunpack.i.l.bf16 %v4636_v51  ;;  %v2655_v11 = vpop.permute.xlu0 %2654 }
 0xfb5   : > { %4375 = vmatprep.subr.bf16.mxu0 %v4374_v49 }
 0xfb6   : > { %4377 = vmatpush3.bf16.msra.mxu0 %v4374_v49  ;;  %v4388_v32 = vpack.c.bf16 %v4638_v56, %v4637_v57 }
 0xfb7   : > { %v4703_v58 = vpop.eup %4702  ;;  %4385 = vmatprep.subr.bf16.mxu0 %v4384_v55  ;;  %v2657_v0 = vpop.permute.xlu1 %2656 }
 0xfb8   : > { %v4705_v61 = vpop.eup %4704  ;;  %v2564_v62 = vmul.f32 %v4703_v58, %v4697_v31 }
 0xfb9   : > { %4200 = vmatmul.mubr.msk.f32.vlgmr.msra.gmra.mrb[12].mxu0 %vm1181_vm5, %v2362_v59  ;;  %v2566_v63 = vmul.f32 %v4705_v61, %v4695_v30 }
 0xfba   : > { %4387 = vmatpush3.bf16.msra.mxu0 %v4384_v55  ;;  %4213 = vmatprep.mubr.msk.f32.mxu0 %vm1181_vm5, %v2564_v62 }
 0xfbb   : > { %4390 = vmatprep.subr.msk.bf16.mxu0 %vm5594_vm3, %v4388_v32 }
 0xfbd   : > { %4214 = vmatmul.mubr.msk.f32.vlgmr.msra.gmra.mrb[14].mxu0 %vm1181_vm5, %v2566_v63 }
 0xfbe   : > { %4220 = vmatprep.mubr.msk.f32.mxu0 %vm1093_vm2, %v2655_v11 }
 0xfc3   : > { %4393 = vmatpush3.bf16.xpose.msk.msra.mxu0 %vm5594_vm3, %v4388_v32 }
 0xfca   : > { %4221 = vmatmul.mubr.msk.f32.vlgmr.msra.gmra.mrb[16].mxu0 %vm1093_vm2, %v2657_v0 }
0x108c   : > { %v5811_v10 = vpop.f32.mrb[12].mxu0 }
0x108d   : > { %v5813_v1 = vpop.f32.mrb[13].mxu0 }
0x1090   : > { %v5815_v2 = vpop.f32.mrb[14].mxu0 }
0x1091   : > { %v5817_v3 = vpop.f32.mrb[15].mxu0 }
0x109d   : > { %v4222_v4 = vpop.f32.mrb[16].mxu0 }
0x109e   : > { %v2746_v8 = vmul.f32 0.35355338, %v4222_v4  ;;  %v2736_v5 = vpop.f32.mrb[17].mxu0 }
0x109f   : > { %v2745_v6 = vmul.f32 0.35355338, %v2736_v5 }
0x10a0   : > { %v2748_v7 = vsel %vm997_vm8, %v2746_v8, -1000000.0 }
0x10a1   : > { %v2752_v9 = vsel %vm1181_vm5, %v2748_v7, -inf  ;;  %v2747_v13 = vsel %vm996_vm9, %v2745_v6, -1000000.0 }
0x10a2   : > { %2753 = vmax.xlane.f32.xlu1 %v2752_v9  ;;  %v2749_v14 = vsel %vm1181_vm5, %v2747_v13, -inf  ;;  %v2068_v9 = vld [vmem:[%s5552_s22] sm:$0xff] }
0x10a3   : > { %2750 = vmax.xlane.f32.xlu0 %v2749_v14  ;;  %v2070_v14 = vld [vmem:[%s5552_s22 + $0x10] sm:$0xff] }
0x10b3   : > { %4640 = vrot.lane.b32.xlu1 %v5743_v50, %s5055_s7  ;;  %s6160_s7 = scalar_lea.vmem %s6159_s11, %s5502_s26  ;;  %s6166_s11 = sld [smem:[#allocation48_spill]] (!%p3954_p9) }
0x10b7   : > { %2858 = vrot.lane.b32.xlu1 %v5755_v53, %s5059_s20 }
0x10bb   : > { %2860 = vrot.lane.b32.xlu1 %v5751_v52, %s5059_s20 }
0x112f   : > { %v2754_v15 = vpop.xlane.xlu1 %2753 }
0x1130   : > { %v2756_v17 = vsub.f32 %v2748_v7, %v2754_v15  ;;  %v2751_v18 = vpop.xlane.xlu0 %2750 }
0x1131   : > { %v2755_v19 = vsub.f32 %v2747_v13, %v2751_v18  ;;  %v2069_v13 = vld [vmem:[%s5552_s22 + $0x8] sm:$0xff] }
0x1132   : > { %v2759_v20 = vmul.f32 1.442695, %v2756_v17  ;;  %v4408_v15 = vpack.c.bf16 %v2069_v13, %v2068_v9 }
0x1133   : > { %v2757_v21 = vmul.f32 1.442695, %v2755_v19  ;;  %v4641_v22 = vpop.permute.xlu1 %4640 }
0x1134   : > { %4706 = vpow2.f32 %v2759_v20  ;;  %v4643_v23 = vunpack.i.h.bf16 %v4641_v22  ;;  %v4642_v26 = vunpack.i.l.bf16 %v4641_v22 }
0x1135   : > { %4708 = vpow2.f32 %v2757_v21 }
0x1136   : > { %v4394_v27 = vpack.c.bf16 %v4643_v23, %v4642_v26 }
0x1137   : > { %v2859_v39 = vpop.permute.xlu1 %2858 }
0x1138   : > { %4395 = vmatprep.subr.bf16.mxu1 %v4394_v27 }
0x1139   : > { %4397 = vmatpush3.bf16.msra.mxu1 %v4394_v27 }
0x113b   : > { %v2861_v40 = vpop.permute.xlu1 %2860 }
0x113e   : > { %v4707_v28 = vpop.eup %4706 }
0x113f   : > { %v2764_v53 = vsel %vm1181_vm5, %v4707_v28, 0.0  ;;  %v4709_v24 = vpop.eup %4708 }
0x1140   : > { %2765 = vadd.xlane.f32.xlu0 %v2764_v53  ;;  %v2761_v52 = vsel %vm1181_vm5, %v4709_v24, 0.0 }
0x1144   : > { %2762 = vadd.xlane.f32.xlu0 %v2761_v52 }
0x115a   : > { %4645 = vrot.lane.b32.xlu0 %v5743_v50, %s5059_s20 }
0x11cd   : > { %v2766_v29 = vpop.xlane.xlu0 %2765 }
0x11ce   : > { %4710 = vrcp.f32 %v2766_v29 }
0x11d1   : > { %v2763_v25 = vpop.xlane.xlu0 %2762 }
0x11d2   : > { %4712 = vrcp.f32 %v2763_v25 }
0x11d5   : > { %v4646_v30 = vpop.permute.xlu0 %4645 }
0x11d6   : > { %v4648_v31 = vunpack.i.h.bf16 %v4646_v30  ;;  %v4647_v36 = vunpack.i.l.bf16 %v4646_v30 }
0x11d8   : > { %v4398_v35 = vpack.c.bf16 %v4648_v31, %v4647_v36  ;;  %v4711_v37 = vpop.eup %4710 }
0x11d9   : > { %v2770_v12 = vmul.f32 %v4711_v37, %v4707_v28 }
0x11da   : > { %4400 = vmatprep.subr.msk.bf16.mxu1 %vm5594_vm3, %v4398_v35 }
0x11dc   : > { %v4713_v34 = vpop.eup %4712 }
0x11dd   : > { %v2768_v38 = vmul.f32 %v4713_v34, %v4709_v24 }
0x11df   : > { %4227 = vmatprep.mubr.msk.f32.mxu1 %vm1181_vm5, %v2768_v38 }
0x11e0   : > { %4228 = vmatmul.mubr.msk.f32.vlgmr.msra.gmra.mrb[16].mxu1 %vm1181_vm5, %v2770_v12 }
0x11e1   : > { %4403 = vmatpush3.bf16.xpose.msk.msra.mxu1 %vm5594_vm3, %v4398_v35  ;;  %4234 = vmatprep.mubr.msk.f32.mxu1 %vm1093_vm2, %v2859_v39 }
0x11e8   : > { %4235 = vmatmul.mubr.msk.f32.vlgmr.msra.gmra.mrb[18].mxu1 %vm1093_vm2, %v2861_v40 }
0x12b3   : > { %v4229_v41 = vpop.f32.mrb[16].mxu1 }
0x12b4   : > { %v2849_v42 = vpop.f32.mrb[17].mxu1 }
0x12bb   : > { %v4236_v43 = vpop.f32.mrb[18].mxu1 }
0x12bc   : > { %v2950_v44 = vmul.f32 0.35355338, %v4236_v43  ;;  %v2940_v45 = vpop.f32.mrb[19].mxu1  ;;  %v3219_v43 = vld [vmem:[%s5554_s19] sm:$0xff] }
0x12bd   : > { %v2949_v48 = vmul.f32 0.35355338, %v2940_v45 }
0x12be   : > { %v2952_v49 = vsel %vm997_vm8, %v2950_v44, -1000000.0  ;;  %v3220_v44 = vld [vmem:[%s5554_s19 + $0x8] sm:$0xff] }
0x12bf   : > { %v2956_v51 = vsel %vm1181_vm5, %v2952_v49, -inf  ;;  %v2951_v16 = vsel %vm996_vm9, %v2949_v48, -1000000.0  ;;  %v4416_v45 = vpack.c.bf16 %v3220_v44, %v3219_v43  ;;  %v3221_v48 = vld [vmem:[%s5554_s19 + $0x10] sm:$0xff] }
0x12c0   : > { %2957 = vmax.xlane.f32.xlu1 %v2956_v51  ;;  %v2953_v54 = vsel %vm1181_vm5, %v2951_v16, -inf }
0x12c1   : > { %2954 = vmax.xlane.f32.xlu0 %v2953_v54  ;;  %4417 = vmatprep.subr.bf16.mxu1 %v4416_v45  ;;  %v3314_v54 = vld [vmem:[%s5542_s8 + $0x8] sm:$0xff] }
0x12c2   : > { %4419 = vmatpush3.bf16.msra.mxu1 %v4416_v45 }
0x12d1   : > { %4650 = vrot.lane.b32.xlu1 %v5743_v50, %s5058_s5 }
0x12d5   : > { %3066 = vrot.lane.b32.xlu1 %v5815_v2, %s5061_s18 }
0x12d9   : > { %3072 = vrot.lane.b32.xlu1 %v2849_v42, %s5063_s13 }
0x134d   : > { %v2958_v55 = vpop.xlane.xlu1 %2957 }
0x134e   : > { %v2960_v60 = vsub.f32 %v2952_v49, %v2958_v55  ;;  %v2955_v56 = vpop.xlane.xlu0 %2954  ;;  %v3222_v49 = vld [vmem:[%s5554_s19 + $0x18] sm:$0xff] }
0x134f   : > { %v2959_v57 = vsub.f32 %v2951_v16, %v2955_v56  ;;  %v4420_v51 = vpack.c.bf16 %v3222_v49, %v3221_v48  ;;  %v3313_v16 = vld [vmem:[%s5542_s8] sm:$0xff]  ;;  %v3315_v55 = vld [vmem:[%s5542_s8 + $0x10] sm:$0xff]  ;;  %v3316_v56 = vld [vmem:[%s5542_s8 + $0x18] sm:$0xff] }
0x1350   : > { %v2963_v58 = vmul.f32 1.442695, %v2960_v60  ;;  %v4424_v60 = vpack.c.bf16 %v3314_v54, %v3313_v16  ;;  %v3952_v48 = vld [vmem:[%s972_s27] ss:$0 sm:$0xff] }
0x1351   : > { %v2961_v59 = vmul.f32 1.442695, %v2959_v57  ;;  %v4651_v33 = vpop.permute.xlu1 %4650  ;;  %4421 = vmatprep.subr.bf16.mxu1 %v4420_v51  ;;  %v4428_v57 = vpack.c.bf16 %v3316_v56, %v3315_v55  ;;  %v3953_v16 = vld [vmem:[%s975_s12] ss:$0 sm:$0xff] }
0x1352   : > { %v4653_v61 = vunpack.i.h.bf16 %v4651_v33  ;;  %v4652_v62 = vunpack.i.l.bf16 %v4651_v33  ;;  %4423 = vmatpush3.bf16.msra.mxu1 %v4420_v51 }
0x1353   : > { %4714 = vpow2.f32 %v2961_v59  ;;  %v3318_v59 = vld [vmem:[%s5542_s8 + $0x28] sm:$0xff] }
0x1354   : > { %v4404_v32 = vpack.c.bf16 %v4653_v61, %v4652_v62  ;;  %4716 = vpow2.f32 %v2963_v58  ;;  %v3317_v58 = vld [vmem:[%s5542_s8 + $0x20] sm:$0xff] }
0x1355   : > { %v3067_v21 = vpop.permute.xlu1 %3066  ;;  %v4432_v33 = vpack.c.bf16 %v3318_v59, %v3317_v58  ;;  %v3462_v58 = vld [vmem:[%s6165_s30] sm:$0xff] (!%p3954_p9)  ;;  %v3463_v59 = vld [vmem:[%s6165_s30 + $0x8] sm:$0xff] (!%p3954_p9) }
0x1356   : > { %4405 = vmatprep.subr.bf16.mxu0 %v4404_v32  ;;  %v3087_v28 = vsel %vm1093_vm2, %v5811_v10, %v3067_v21 }
0x1357   : > { %4407 = vmatpush3.bf16.msra.mxu0 %v4404_v32 }
0x1358   : > { %4409 = vmatprep.subr.bf16.mxu0 %v4408_v15 }
0x1359   : > { %v3073_v23 = vpop.permute.xlu1 %3072 }
0x135d   : > { %v4715_v50 = vpop.eup %4714 }
0x135e   : > { %v2965_v63 = vsel %vm1181_vm5, %v4715_v50, 0.0  ;;  %v4717_v11 = vpop.eup %4716 }
0x135f   : > { %2966 = vadd.xlane.f32.xlu0 %v2965_v63  ;;  %v2968_v0 = vsel %vm1181_vm5, %v4717_v11, 0.0 }
0x1363   : > { %2969 = vadd.xlane.f32.xlu0 %v2968_v0 }
0x1379   : > { %3064 = vrot.lane.b32.xlu0 %v5817_v3, %s5061_s18  ;;  %v2071_v3 = vld [vmem:[%s5552_s22 + $0x18] sm:$0xff] }
0x137a   : > { %v4412_v17 = vpack.c.bf16 %v2071_v3, %v2070_v14  ;;  %v3320_v3 = vld [vmem:[%s5542_s8 + $0x38] sm:$0xff] }
0x137d   : > { %3074 = vrot.lane.b32.xlu0 %v4229_v41, %s5063_s13 }
0x13ec   : > { %v2967_v2 = vpop.xlane.xlu0 %2966 }
0x13ed   : > { %4718 = vrcp.f32 %v2967_v2  ;;  %v3944_v2 = vld [vmem:[%s6158_s28] ss:$0 sm:$0xff] }
0x13f0   : > { %v2970_v4 = vpop.xlane.xlu0 %2969 }
0x13f1   : > { %4720 = vrcp.f32 %v2970_v4 }
0x13f4   : > { %v3065_v20 = vpop.permute.xlu0 %3064 }
0x13f5   : > { %v3086_v26 = vsel %vm1093_vm2, %v5813_v1, %v3065_v20 }
0x13f6   : > { %v3088_v24 = vsel %vm1181_vm5, %v3086_v26, %v3073_v23 }
0x13f7   : > { %v4719_v8 = vpop.eup %4718 }
0x13f8   : > { %v2972_v5 = vmul.f32 %v4719_v8, %v4715_v50  ;;  %v3075_v22 = vpop.permute.xlu0 %3074 }
0x13f9   : > { %v3089_v52 = vsel %vm1181_vm5, %v3087_v28, %v3075_v22 }
0x13fa   : > { %4241 = vmatprep.mubr.msk.f32.mxu0 %vm1181_vm5, %v2972_v5 }
0x13fb   : > { %v4721_v6 = vpop.eup %4720 }
0x13fc   : > { %v2974_v7 = vmul.f32 %v4721_v6, %v4717_v11  ;;  %v3945_v6 = vld [vmem:[%s6160_s7] ss:$0 sm:$0xff] }
0x13fe   : > { %4242 = vmatmul.mubr.msk.f32.vlgmr.msra.gmra.mrb[18].mxu0 %vm1181_vm5, %v2974_v7 }
0x13ff   : > { %4411 = vmatpush3.bf16.msra.mxu0 %v4408_v15  ;;  %v3319_v15 = vld [vmem:[%s5542_s8 + $0x30] sm:$0xff] }
0x1400   : > { %4413 = vmatprep.subr.bf16.mxu0 %v4412_v17 }
0x1403   : > { %4415 = vmatpush3.bf16.msra.mxu0 %v4412_v17  ;;  %v4436_v17 = vpack.c.bf16 %v3320_v3, %v3319_v15 }
0x1404   : > { %4425 = vmatprep.subr.bf16.mxu0 %v4424_v60 }
0x14d1   : > { %v4243_v18 = vpop.f32.mrb[18].mxu0 }
0x14d2   : > { %3082 = vrot.lane.b32.xlu0 %v4243_v18, %s5064_s21  ;;  %v3053_v19 = vpop.f32.mrb[19].mxu0  ;;  %v3946_v18 = vld [vmem:[%s961_s14] ss:$0 sm:$0xff] }
0x14d3   : > { %3080 = vrot.lane.b32.xlu1 %v3053_v19, %s5064_s21 }
0x1544   : > { %v3083_v27 = vpop.permute.xlu0 %3082 }
0x1545   : > { %v3081_v53 = vpop.permute.xlu1 %3080  ;;  %v3091_v25 = vsel %vm1931_vm7, %v3089_v52, %v3083_v27  ;;  %v3949_v27 = vld [vmem:[%s969_s25] ss:$0 sm:$0xff] }
0x1546   : > { %v3090_v29 = vsel %vm1931_vm7, %v3088_v24, %v3081_v53 }
0x1547   : > { %4252 = vmatprep.mubr.msk.f32.mxu0 %vm987_vm1, %v3090_v29 }
0x1548   : > { %4253 = vmatmul.mubr.msk.f32.vlgmr.msra.gmra.mrb[20].mxu0 %vm987_vm1, %v3091_v25 }
0x1549   : > { %4427 = vmatpush3.bf16.msra.mxu0 %v4424_v60 }
0x154a   : > { %4429 = vmatprep.subr.bf16.mxu0 %v4428_v57 }
0x154d   : > { %4431 = vmatpush3.bf16.msra.mxu0 %v4428_v57 }
0x154e   : > { %4433 = vmatprep.subr.bf16.mxu0 %v4432_v33 }
0x1551   : > { %4435 = vmatpush3.bf16.msra.mxu0 %v4432_v33  ;;  %v3464_v33 = vld [vmem:[%s6165_s30 + $0x10] sm:$0xff] (!%p3954_p9) }
0x1552   : > { %4437 = vmatprep.subr.bf16.mxu0 %v4436_v17 }
0x1555   : > { %4439 = vmatpush3.bf16.msra.mxu0 %v4436_v17 }
0x161b   : > { %v4254_v30 = vpop.f32.mrb[20].mxu0 }
0x161c   : > { %v3174_v1 = vadd.f32 %v4254_v30, %v5737_v47  ;;  %v3164_v31 = vpop.f32.mrb[21].mxu0 }
0x161d   : > { %v3173_v36 = vadd.f32 %v3164_v31, %v5735_v46 }
0x161e   : > { %v3180_v10 = vsel %vm987_vm1, %v3174_v1, 0.0 }
0x161f   : > { %3181 = vadd.xlane.f32.xlu0 %v3180_v10  ;;  %v3177_v35 = vsel %vm987_vm1, %v3173_v36, 0.0 }
0x1620   : > { %3178 = vadd.xlane.f32.xlu1 %v3177_v35 }
0x16ac   : > { %v3182_v37 = vpop.xlane.xlu0 %3181 }
0x16ad   : > { %v3184_v34 = vmul.f32 0.03125, %v3182_v37  ;;  %v3179_v38 = vpop.xlane.xlu1 %3178 }
0x16ae   : > { %v3183_v12 = vmul.f32 0.03125, %v3179_v38 }
0x16af   : > { %v3186_v39 = vsub.f32 %v3174_v1, %v3184_v34 }
0x16b0   : > { %v3185_v40 = vsub.f32 %v3173_v36, %v3183_v12 }
0x16b1   : > { %v3188_v47 = vmul.f32 %v3186_v39, %v3186_v39 }
0x16b2   : > { %v3187_v41 = vmul.f32 %v3185_v40, %v3185_v40 }
0x16b3   : > { %v3192_v46 = vsel %vm987_vm1, %v3188_v47, 0.0 }
0x16b4   : > { %3193 = vadd.xlane.f32.xlu1 %v3192_v46  ;;  %v3189_v42 = vsel %vm987_vm1, %v3187_v41, 0.0 }
0x16b5   : > { %3190 = vadd.xlane.f32.xlu0 %v3189_v42 }
0x1741   : > { %v3194_v61 = vpop.xlane.xlu1 %3193 }
0x1742   : > { %v3196_v62 = vmul.f32 0.03125, %v3194_v61  ;;  %v3191_v32 = vpop.xlane.xlu0 %3190  ;;  %v4440_v61 = vpack.c.bf16 (!%p3954_p9), %v3463_v59, %v3462_v58 }
0x1743   : > { %v3195_v50 = vmul.f32 0.03125, %v3191_v32 }
0x1744   : > { %v3198_v63 = vadd.f32 1e-05, %v3196_v62  ;;  %v3465_v62 = vld [vmem:[%s6165_s30 + $0x18] sm:$0xff] (!%p3954_p9)  ;;  %4441 = vmatprep.subr.bf16.mxu0 (!%p3954_p9), %v4440_v61 }
0x1745   : > { %v3197_v11 = vadd.f32 1e-05, %v3195_v50  ;;  %v4444_v32 = vpack.c.bf16 (!%p3954_p9), %v3465_v62, %v3464_v33  ;;  %v3955_v50 = vld [vmem:[%s6166_s11] ss:$0 sm:$0xff] (!%p3954_p9) }
0x1746   : > { %4722 = vrsqrt.f32 %v3198_v63 }
0x1747   : > { %4724 = vrsqrt.f32 %v3197_v11 }
0x1750   : > { %v4723_v0 = vpop.eup %4722 }
0x1751   : > { %v4725_v4 = vpop.eup %4724  ;;  %v3202_v8 = vmul.f32 %v4723_v0, %v3186_v39 }
0x1752   : > { %v3201_v5 = vmul.f32 %v4725_v4, %v3185_v40 }
0x1753   : > { %v3210_v7 = vmul.f32 %v3944_v2, %v3202_v8 }
0x1754   : > { %v3209_v9 = vmul.f32 %v3944_v2, %v3201_v5 }
0x1755   : > { %v3218_v14 = vadd.f32 %v3945_v6, %v3210_v7 }
0x1756   : > { %v3217_v13 = vadd.f32 %v3945_v6, %v3209_v9 }
0x1758   : > { %4263 = vmatprep.mubr.msk.f32.mxu1 %vm987_vm1, %v3217_v13 }
0x1759   : > { %4264 = vmatmul.mubr.msk.f32.vlgmr.msra.gmra.mrb[20].mxu1 %vm987_vm1, %v3218_v14 }
0x182c   : > { %v4265_v19 = vpop.f32.mrb[20].mxu1 }
0x182d   : > { %v3308_v20 = vadd.f32 %v4265_v19, %v3946_v18  ;;  %v3302_v21 = vpop.f32.mrb[21].mxu1 }
0x182e   : > { %v3303_v22 = vadd.f32 %v3946_v18, %v3302_v21 }
0x182f   : > { %v3312_v26 = vmax.f32 %v3308_v20, 0.0 }
0x1830   : > { %v3311_v23 = vmax.f32 %v3303_v22, 0.0 }
0x1832   : > { %4282 = vmatprep.mubr.msk.f32.mxu0 %vm3328_vm10, %v3311_v23 }
0x1833   : > { %4283 = vmatmul.mubr.msk.f32.vlgmr.msra.gmra.mrb[22].mxu0 %vm3328_vm10, %v3312_v26 }
0x1834   : > { %4443 = vmatpush3.bf16.msra.mxu0 (!%p3954_p9), %v4440_v61 }
0x1835   : > { %4445 = vmatprep.subr.bf16.mxu0 (!%p3954_p9), %v4444_v32 }
0x1838   : > { %4447 = vmatpush3.bf16.msra.mxu0 (!%p3954_p9), %v4444_v32 }
0x1906   : > { %v4284_v28 = vpop.f32.mrb[22].mxu0 }
0x1907   : > { %v3407_v53 = vadd.f32 %v4284_v28, %v3949_v27  ;;  %v3401_v24 = vpop.f32.mrb[23].mxu0 }
0x1908   : > { %v3402_v52 = vadd.f32 %v3949_v27, %v3401_v24 }
0x1909   : > { %v3411_v29 = vadd.f32 %v3407_v53, %v3218_v14 }
0x190a   : > { %v3410_v25 = vadd.f32 %v3402_v52, %v3217_v13 }
0x190b   : > { %v3417_v30 = vsel %vm987_vm1, %v3411_v29, 0.0 }
0x190c   : > { %3418 = vadd.xlane.f32.xlu1 %v3417_v30  ;;  %v3414_v1 = vsel %vm987_vm1, %v3410_v25, 0.0 }
0x190d   : > { %3415 = vadd.xlane.f32.xlu0 %v3414_v1 }
0x1999   : > { %v3419_v31 = vpop.xlane.xlu1 %3418 }
0x199a   : > { %v3421_v36 = vmul.f32 0.03125, %v3419_v31  ;;  %v3416_v10 = vpop.xlane.xlu0 %3415 }
0x199b   : > { %v3420_v35 = vmul.f32 0.03125, %v3416_v10 }
0x199c   : > { %v3423_v37 = vsub.f32 %v3411_v29, %v3421_v36 }
0x199d   : > { %v3422_v34 = vsub.f32 %v3410_v25, %v3420_v35 }
0x199e   : > { %v3425_v38 = vmul.f32 %v3423_v37, %v3423_v37 }
0x199f   : > { %v3424_v12 = vmul.f32 %v3422_v34, %v3422_v34 }
0x19a0   : > { %v3429_v39 = vsel %vm987_vm1, %v3425_v38, 0.0 }
0x19a1   : > { %3430 = vadd.xlane.f32.xlu1 %v3429_v39  ;;  %v3426_v40 = vsel %vm987_vm1, %v3424_v12, 0.0 }
0x19a2   : > { %3427 = vadd.xlane.f32.xlu0 %v3426_v40 }
0x1a2e   : > { %v3431_v47 = vpop.xlane.xlu1 %3430 }
0x1a2f   : > { %v3433_v41 = vmul.f32 0.03125, %v3431_v47  ;;  %v3428_v46 = vpop.xlane.xlu0 %3427 }
0x1a30   : > { %v3432_v42 = vmul.f32 0.03125, %v3428_v46 }
0x1a31   : > { %v3435_v43 = vadd.f32 1e-05, %v3433_v41 }
0x1a32   : > { %v3434_v44 = vadd.f32 1e-05, %v3432_v42 }
0x1a33   : > { %4726 = vrsqrt.f32 %v3435_v43 }
0x1a34   : > { %4728 = vrsqrt.f32 %v3434_v44 }
0x1a3d   : > { %v4727_v45 = vpop.eup %4726 }
0x1a3e   : > { %v4729_v49 = vpop.eup %4728  ;;  %v3439_v51 = vmul.f32 %v4727_v45, %v3423_v37 }
0x1a3f   : > { %v3438_v54 = vmul.f32 %v4729_v49, %v3422_v34  ;;  %3461 = sbr.rel (%p3954_p9) target bundleno = 6942 (0x1b1e), region = 136 }
0x1a40   : > { %v3447_v55 = vmul.f32 %v3952_v48, %v3439_v51 }
0x1a41   : > { %v3446_v60 = vmul.f32 %v3952_v48, %v3438_v54 }
0x1a42   : > { %v3455_v56 = vadd.f32 %v3953_v16, %v3447_v55 }
0x1a43   : > { %v3454_v57 = vadd.f32 %v3953_v16, %v3446_v60 }
0x1a44   : > { %3457 = vst.msk [vmem:[#allocation2 + $0x8] sm:$0xff] %vm987_vm1, %v3455_v56 }
0x1a45   : > { %3456 = vst.msk [vmem:[#allocation2] sm:$0xff] %vm987_vm1, %v3454_v57  ;;  %4293 = vmatprep.mubr.msk.f32.mxu0 (!%p3954_p9), %vm987_vm1, %v3454_v57 }
0x1a46   : > { %4294 = vmatmul.mubr.msk.f32.vlgmr.msra.gmra.mrb[0].mxu0 %vm987_vm1, %v3455_v56 }
0x1b19   : > { %v4295_v63 = vpop.f32.mrb[0].mxu0 }
0x1b1a   : > { %v3551_v11 = vadd.f32 %v4295_v63, %v3955_v50  ;;  %v3545_v0 = vpop.f32.mrb[1].mxu0 }
0x1b1b   : > { %v3546_v2 = vadd.f32 %v3955_v50, %v3545_v0 }
0x1b1c   : > { %3555 = vst [vmem:[#allocation15 + $0x8] sm:$0xff] %v3551_v11 }
0x1b1d   : > { %3554 = vst [vmem:[#allocation15] sm:$0xff] %v3546_v2 }
0x1b1e PF: > { %s6167_s7 = sld [smem:[#allocation30_spill]]  ;;  %s3971_s16 = sshll.u32 %s5199_s3, 8 }
0x1b1f   : > { %s6168_s20 = sld [smem:[#allocation49_spill]]  ;;  %s3570_s8 = sshll.u32 %s5556_s15, 4  ;;  %s5958_s8 = int_to_ptr.vmem [resolvable:$true] %s3570_s8 }
0x1b20   : > { %s3557_s25 = scalar_lea.sflag [#allocation5], %s5491_s1  ;;  %s4932_s14 = scalar_lea.vmem %s5958_s8, 256 }
0x1b21   : > { %p4933_p7 = scmp.ne.s32.totalorder %s5958_s8, %s4932_s14  ;;  %s5065_s17 = smov [#allocation14]  }
0x1b22   : > { %s4936_s13 = sshll.u32 %s5065_s17, 4  ;;  %s4937_s13 = int_to_ptr.vmem [resolvable:$false] %s4936_s13 }
0x1b23   : > { %s4938_s21 = scalar_lea.vmem %s4937_s13, 512  ;;  %p4939_p13 = scmp.lt.s32.totalorder %s5958_s8, %s4937_s13 }
0x1b24   : > { %p6169_p4 = scmp.ne.s32.totalorder %s6167_s7, 0  ;;  %p4940_p1 = scmp.lt.s32.totalorder %s4938_s21, %s4932_s14 }
0x1b25   : > { %s5955_s29 = scalar_lea.hbm %s6168_s20, %s3971_s16 }
0x1b26   : > { %p4934_p5 = pnand %p4933_p7, %p6169_p4  ;;  %p4941_p6 = por %p4940_p1, %p4939_p13 }
0x1b28   : > { %p4935_p3 = pneg %p4934_p5 }
0x1b2a   : > { %p4942_p8 = pnand %p4941_p6, %p4935_p3 }
0x1b2c   : > { %4945 = shalt.err (!%p4942_p8)
}
0x1b2d   : > { %s4946_s15 = scalar_lea.hbm %s5955_s29, 256  ;;  %s4950_s4 = scalar_lea.hbm %s6168_s20, 512 }
0x1b2e   : > { %p4947_p12 = scmp.ne.s32.totalorder %s5955_s29, %s4946_s15  ;;  %p4951_p2 = scmp.lt.u32.totalorder %s5955_s29, %s6168_s20 }
0x1b2f   : > { %p4952_p11 = scmp.lt.u32.totalorder %s4950_s4, %s4946_s15  ;;  %p4954_p7 = scmp.lt.u32.totalorder %s4946_s15, %s5955_s29 }
0x1b30   : > { %p4948_p0 = pnand %p4947_p12, %p6169_p4 }
0x1b31   : > { %p4953_p9 = por %p4952_p11, %p4951_p2 }
0x1b32   : > { %p4949_p10 = pneg %p4948_p0 }
0x1b33   : > { %p4955_p5 = por %p4954_p7, %p4953_p9 }
0x1b35   : > { %p4956_p3 = pnand %p4955_p5, %p4949_p10 }
0x1b37   : > { %4959 = shalt.err (!%p4956_p3)
}
0x1b38   : > { %s5066_s12 = smov 128   ;;  %s5067_s26 = smov [#allocation15]  }
0x1b39   : > { %4470 = dma.vmem_to_hbm [thread:$0]  (%p6169_p4), %s5958_s8, 256, %s5955_s29, %s3557_s25, %s5066_s12, %s5066_s12, %s5061_s18  }
0x1b3a   : > { %s3583_s19 = sshll.u32 %s5067_s26, 4  ;;  %p6170_p1 = scmp.eq.s32.totalorder %s5199_s3, 1  ;;  %s3584_s19 = int_to_ptr.vmem [resolvable:$true] %s3583_s19 }
0x1b3b   : > { %s4960_s28 = scalar_lea.vmem %s3584_s19, 256  ;;  %p4967_p12 = scmp.lt.s32.totalorder %s3584_s19, %s3584_s19 }
0x1b3c   : > { %p4961_p13 = scmp.ne.s32.totalorder %s3584_s19, %s4960_s28  ;;  %p4968_p0 = scmp.lt.s32.totalorder %s4960_s28, %s4960_s28 }
0x1b3e   : > { %p4962_p6 = pnand %p4961_p13, %p6170_p1  ;;  %p4969_p10 = por %p4968_p0, %p4967_p12 }
0x1b40   : > { %p4963_p8 = pneg %p4962_p6 }
0x1b42   : > { %p4970_p2 = pnand %p4969_p10, %p4963_p8 }
0x1b44   : > { %4973 = shalt.err (!%p4970_p2)
}
0x1b45   : > { %s6171_s1 = sld [smem:[#allocation50_spill]]  ;;  %p6172_p11 = pmov %p6170_p1 }
0x1b4b   : > { %s4974_s11 = scalar_lea.hbm %s6171_s1, 256 }
0x1b4c   : > { %p4975_p4 = scmp.ne.s32.totalorder %s6171_s1, %s4974_s11  ;;  %p4980_p5 = scmp.lt.u32.totalorder %s4974_s11, %s6171_s1 }
0x1b4e   : > { %p4976_p9 = pnand %p4975_p4, %p6172_p11 }
0x1b50   : > { %p4977_p7 = pneg %p4976_p9 }
0x1b52   : > { %p4982_p3 = pnand %p4980_p5, %p4977_p7 }
0x1b54   : > { %4985 = shalt.err (!%p4982_p3)
}
0x1b55   : > { %p6173_p13 = pmov %p6170_p1 }
0x1b57   : > { %4472 = dma.vmem_to_hbm [thread:$0]  (%p6173_p13), %s3584_s19, 256, %s6171_s1, [#allocation16], %s5066_s12, %s5066_s12, %s5061_s18  }
0x1b58   : > { %5019 = dma.done.wait (%p6170_p1), [#allocation16], 256   ;;  %p6174_p6 = pmov %p6170_p1 }
0x1b5a   : > { %5021 = vsyncadd (%p6174_p6), [#allocation16], 4294967040 }
0x1b5b PF: > { %s6175_s25 = sld [smem:[#allocation23_spill]]  ;;  %s6176_s14 = sld [smem:[#allocation27_spill]] }
0x1b5c   : > { %s6177_s17 = sld [smem:[#allocation26_spill]] }
0x1b61   : > { %s3602_s13 = sand.u32 1, %s6175_s25   ;;  %p6178_p8 = scmp.ne.s32.totalorder %s6176_s14, 0 }
0x1b62   : > { %p6179_p12 = scmp.ge.s32.totalorder %s6177_s17, 2  ;;  %s3603_s21 = scalar_lea.sflag [#allocation5], %s3602_s13 }
0x1b64   : > { %p4500_p0 = pnand %p6179_p12, %p6178_p8 }
0x1b66   : > { %5023 = dma.done.wait (!%p4500_p0), %s3603_s21, 256  }
0x1b67   : > { %5025 = vsyncadd (!%p4500_p0), %s3603_s21, 4294967040  ;;  %s6180_s27 = sld [smem:[#allocation28_spill]]  ;;  %s6181_s2 = sld [smem:[#allocation24_spill]] }
0x1b68   : > { %s6182_s25 = sld [smem:[#allocation25_spill]]  ;;  %s6183_s26 = sld [smem:[#allocation29_spill]] }
0x1b6d   : > { %p36_p10 = scmp.ge.s32.totalorder %s6180_s27, 4  }
0x1b6f   :  { %38 = sbr.rel (!%p36_p10) target bundleno = 28 (0x1c), region = 231 }
0x1b76   :  { %3608 = vsyncpa [#allocation4], 1 }
0x1b77   :  { %3610 = vsyncpa [#allocation4 + $0x1], 1 }
0x1b78   :  { %3611 = vsyncpa [#allocation7], 1 }
0x1b79   :  { %3612 = vsyncpa [#allocation10], 1 }
0x1b7a   :  { %3613 = vsyncpa [#allocation5], 1 }
0x1b7b   :  { %3615 = vsyncpa [#allocation5 + $0x1], 1 }
0x1b7c   :  { %3616 = vsyncpa [#allocation16], 1 }

</bundles_post_ra>
